<compile_context>
chip_gen: v7x
topology: tpu7x:2x2x1
jax: 0.10.0
libtpu: 0.0.40
codegen_flags: <defaults>
</compile_context>

<pallas_src>
import jax
import jax.numpy as jnp
from jax import lax
from jax.experimental import pallas as pl
from jax.experimental.pallas import tpu as pltpu

EMB = 64                        # embedding size
EPS = 1e-5                      # torch.nn.LayerNorm default eps
TILE_N = 256                    # node-row tile (embed / post-module grids)
TILE_E = 512                    # edges per conv grid step
UNROLL = 8                      # unroll factor for gather / scatter loops
VMEM_LIMIT = 48 * 1024 * 1024   # explicit scoped-VMEM budget (fits all gens)


# ----------------------------------------------------------------------------
# helpers
# ----------------------------------------------------------------------------
def _round_up(n, m):
    return ((n + m - 1) // m) * m


def _pad_rows_to(x, n):
    pad = n - x.shape[0]
    return x if pad == 0 else jnp.pad(x, ((0, pad), (0, 0)))


def _layernorm(x, g, b):
    # two-pass variance, matching PyTorch LayerNorm numerics
    m = jnp.mean(x, axis=-1, keepdims=True)
    d = x - m
    var = jnp.mean(d * d, axis=-1, keepdims=True)
    return d * lax.rsqrt(var + EPS) * g + b


def _dot(a, b):
    return jnp.dot(a, b, preferred_element_type=jnp.float32)


def _full_spec(a):
    # whole-array block, constant index map: stays resident across the grid
    nd = a.ndim
    return pl.BlockSpec(tuple(a.shape), lambda *_: (0,) * nd)


# ----------------------------------------------------------------------------
# kernels
# ----------------------------------------------------------------------------
def embed_kernel(x_ref, lng_ref, lnb_ref, w1_ref, b1_ref, w2_ref, b2_ref, o_ref):
    # LayerNorm -> Linear -> ReLU -> Linear -> ReLU  (one row-tile per step)
    h = _layernorm(x_ref[...], lng_ref[...], lnb_ref[...])
    h = jnp.maximum(_dot(h, w1_ref[...]) + b1_ref[...], 0.0)
    h = jnp.maximum(_dot(h, w2_ref[...]) + b2_ref[...], 0.0)
    o_ref[...] = h


def make_msg_agg_kernel(tile_e, n_real_edges):
    """Stage A of BipartiteGraphConvolution: gather -> fused K=128 message
    matmul -> segment-sum aggregation onto the resident [Nr_pad, 64] output."""

    def kernel(src_ref, tgt_ref, seg_ref,               # scalar prefetch (SMEM)
               left_ref, right_ref,                     # node tables (VMEM)
               wlr_ref, bmsg_ref, fg_ref, fb_ref, wf_ref, bf_ref,
               agg_ref,                                 # [Nr_pad, 64] resident out
               fij_ref, msg_ref, acc_ref):              # scratch
        ke = pl.program_id(0)
        base = ke * tile_e

        @pl.when(ke == 0)
        def _init():
            agg_ref[...] = jnp.zeros_like(agg_ref)      # zero in-degree rows stay 0
            acc_ref[...] = jnp.zeros_like(acc_ref)      # cross-tile segment carry

        @pl.when(base < n_real_edges)                   # skip fully-padded tiles
        def _tile():
            # ---- unrolled gather straight into one (tile_e, 128) buffer ----
            #   lanes [0:64]  <- x_i = right[tgt]   (feature_module_left input)
            #   lanes [64:128]<- x_j = left[src]    (feature_module_right input)
            def gather(i, c):
                t = tgt_ref[base + i]
                s = src_ref[base + i]
                fij_ref[pl.ds(i, 1), pl.ds(0, EMB)] = right_ref[pl.ds(t, 1), :]
                fij_ref[pl.ds(i, 1), pl.ds(EMB, EMB)] = left_ref[pl.ds(s, 1), :]
                return c
            lax.fori_loop(0, tile_e, gather, 0, unroll=UNROLL)

            # ---- fused message: [x_i | x_j] @ [Wl ; Wr] + b_msg -> LN -> ReLU -> Linear
            pre = _dot(fij_ref[...], wlr_ref[...]) + bmsg_ref[...]
            h = jnp.maximum(_layernorm(pre, fg_ref[...], fb_ref[...]), 0.0)
            msg_ref[...] = _dot(h, wf_ref[...]) + bf_ref[...]      # [tile_e, 64]

            # ---- segment-sum scatter (edges sorted by target): accumulate in
            # a register carry, store each output row once when its segment
            # ends (seg_ref marks the last edge of every segment).
            def scatter(i, acc):
                acc = acc + msg_ref[pl.ds(i, 1), :]
                flush = seg_ref[base + i] > 0
                t = tgt_ref[base + i]

                @pl.when(flush)
                def _flush():
                    agg_ref[pl.ds(t, 1), :] = acc
                return jnp.where(flush, jnp.zeros_like(acc), acc)

            acc_ref[...] = lax.fori_loop(0, tile_e, scatter, acc_ref[...],
                                         unroll=UNROLL)

    return kernel


def make_post_kernel(with_head):
    """Stage B: post LayerNorm + output MLP (row-tiled, parallel).  The
    concat([post, right]) @ Wo1 is split into two accumulated matmuls.
    Optionally fuses the final policy head (last conv only)."""
    if with_head:
        def kernel(agg_ref, right_ref, pg_ref, pb_ref, w1a_ref, w1b_ref,
                   b1_ref, w2_ref, b2_ref, hw1_ref, hb1_ref, hw2_ref, o_ref):
            post = _layernorm(agg_ref[...], pg_ref[...], pb_ref[...])
            h = jnp.maximum(_dot(post, w1a_ref[...])
                            + _dot(right_ref[...], w1b_ref[...]) + b1_ref[...], 0.0)
            feats = _dot(h, w2_ref[...]) + b2_ref[...]
            z = jnp.maximum(_dot(feats, hw1_ref[...]) + hb1_ref[...], 0.0)
            o_ref[...] = _dot(z, hw2_ref[...])                     # [tile, 1]
        return kernel

    def kernel(agg_ref, right_ref, pg_ref, pb_ref, w1a_ref, w1b_ref,
               b1_ref, w2_ref, b2_ref, o_ref):
        post = _layernorm(agg_ref[...], pg_ref[...], pb_ref[...])
        h = jnp.maximum(_dot(post, w1a_ref[...])
                        + _dot(right_ref[...], w1b_ref[...]) + b1_ref[...], 0.0)
        o_ref[...] = _dot(h, w2_ref[...]) + b2_ref[...]            # [tile, 64]
    return kernel


# ----------------------------------------------------------------------------
# pallas_call wrappers
# ----------------------------------------------------------------------------
def call_embed(p, x, n_pad, tile=TILE_N):
    x = _pad_rows_to(x, n_pad)
    f = x.shape[1]
    weights = (p["ln_g"], p["ln_b"], p["w1"], p["b1"], p["w2"], p["b2"])
    return pl.pallas_call(
        embed_kernel,
        out_shape=jax.ShapeDtypeStruct((n_pad, EMB), jnp.float32),
        grid=(n_pad // tile,),
        in_specs=[pl.BlockSpec((tile, f), lambda i: (i, 0))]
                 + [_full_spec(w) for w in weights],
        out_specs=pl.BlockSpec((tile, EMB), lambda i: (i, 0)),
        compiler_params=pltpu.CompilerParams(
            dimension_semantics=("parallel",), vmem_limit_bytes=VMEM_LIMIT),
    )(x, *weights)


def call_msg_agg(p, left, right, src_s, tgt_s, seg_end, n_real_edges,
                 tile_e=TILE_E):
    nr_pad = right.shape[0]
    n_tiles = src_s.shape[0] // tile_e
    weights = (p["w_lr"], p["b_msg"], p["fln_g"], p["fln_b"], p["wf"], p["bf"])
    return pl.pallas_call(
        make_msg_agg_kernel(tile_e, n_real_edges),
        out_shape=jax.ShapeDtypeStruct((nr_pad, EMB), jnp.float32),
        grid_spec=pltpu.PrefetchScalarGridSpec(
            num_scalar_prefetch=3,
            grid=(n_tiles,),
            in_specs=[_full_spec(left), _full_spec(right)]
                     + [_full_spec(w) for w in weights],
            out_specs=pl.BlockSpec((nr_pad, EMB), lambda *_: (0, 0)),
            scratch_shapes=[pltpu.VMEM((tile_e, 2 * EMB), jnp.float32),  # [x_i|x_j]
                            pltpu.VMEM((tile_e, EMB), jnp.float32),      # messages
                            pltpu.VMEM((1, EMB), jnp.float32)],          # seg carry
        ),
        compiler_params=pltpu.CompilerParams(
            dimension_semantics=("arbitrary",), vmem_limit_bytes=VMEM_LIMIT),
    )(src_s, tgt_s, seg_end, left, right, *weights)


def call_post(p, agg, right, head=None, tile=TILE_N):
    nr = agg.shape[0]
    weights = [p["pln_g"], p["pln_b"], p["wo1a"], p["wo1b"], p["bo1"],
               p["wo2"], p["bo2"]]
    out_dim = EMB
    if head is not None:
        weights += [head["w1"], head["b1"], head["w2"]]
        out_dim = 1
    return pl.pallas_call(
        make_post_kernel(head is not None),
        out_shape=jax.ShapeDtypeStruct((nr, out_dim), jnp.float32),
        grid=(nr // tile,),
        in_specs=[pl.BlockSpec((tile, EMB), lambda i: (i, 0)),
                  pl.BlockSpec((tile, EMB), lambda i: (i, 0))]
                 + [_full_spec(w) for w in weights],
        out_specs=pl.BlockSpec((tile, out_dim), lambda i: (i, 0)),
        compiler_params=pltpu.CompilerParams(
            dimension_semantics=("parallel",), vmem_limit_bytes=VMEM_LIMIT),
    )(agg, right, *weights)


def _fold_conv_params(p):
    # edge_embedding = LayerNorm over a size-1 feature -> its output is exactly
    # its bias, so feature_module_edge(edge) is a constant row folded into the
    # message bias (raw edge feature values cannot influence the model).
    edge_row = p["eln_b"][0, 0] * p["we"]                            # [1, 64]
    return dict(
        w_lr=jnp.concatenate([p["wl"], p["wr"]], axis=0),            # [128, 64]
        b_msg=p["bl"] + edge_row,                                    # [1, 64]
        fln_g=p["fln_g"], fln_b=p["fln_b"], wf=p["wf"], bf=p["bf"],
        pln_g=p["pln_g"], pln_b=p["pln_b"],
        wo1a=p["wo1"][:EMB], wo1b=p["wo1"][EMB:],                    # split concat
        bo1=p["bo1"], wo2=p["wo2"], bo2=p["bo2"],
    )


def bipartite_conv(raw_params, left, right, src_s, tgt_s, seg_end,
                   n_real_edges, head=None):
    p = _fold_conv_params(raw_params)
    agg = call_msg_agg(p, left, right, src_s, tgt_s, seg_end, n_real_edges)
    return call_post(p, agg, right, head=head)


def _prepare_edges(src, tgt, n_real_edges, dummy_tgt, tile_e=TILE_E):
    """Pad edges to a tile multiple (padded edges point at a dedicated dummy
    row), sort by target node and mark segment ends.  Done once per graph."""
    e_pad = _round_up(max(n_real_edges, 1), tile_e)
    pad = e_pad - n_real_edges
    src_p = jnp.concatenate([src.astype(jnp.int32), jnp.zeros((pad,), jnp.int32)])
    tgt_p = jnp.concatenate([tgt.astype(jnp.int32),
                             jnp.full((pad,), dummy_tgt, jnp.int32)])
    order = jnp.argsort(tgt_p)
    src_s = src_p[order]
    tgt_s = tgt_p[order]
    tgt_next = jnp.concatenate([tgt_s[1:], tgt_s[-1:] + 1])
    seg_end = (tgt_s != tgt_next).astype(jnp.int32)
    return src_s, tgt_s, seg_end


# ----------------------------------------------------------------------------
# deterministic parameter init (synthetic; matches the module's shapes)
# ----------------------------------------------------------------------------
def _init_linear(key, fan_in, fan_out, bias=True):
    kw, kb = jax.random.split(key)
    bound = 1.0 / (fan_in ** 0.5)
    w = jax.random.uniform(kw, (fan_in, fan_out), jnp.float32, -bound, bound)
    if bias:
        b = jax.random.uniform(kb, (1, fan_out), jnp.float32, -bound, bound)
        return w, b
    return w, None


def _init_ln(key, dim):
    kg, kb = jax.random.split(key)
    g = 1.0 + 0.05 * jax.random.normal(kg, (1, dim), jnp.float32)
    b = 0.05 * jax.random.normal(kb, (1, dim), jnp.float32)
    return g, b


def _init_embedding(key, nfeat):
    k = jax.random.split(key, 3)
    ln_g, ln_b = _init_ln(k[0], nfeat)
    w1, b1 = _init_linear(k[1], nfeat, EMB)
    w2, b2 = _init_linear(k[2], EMB, EMB)
    return dict(ln_g=ln_g, ln_b=ln_b, w1=w1, b1=b1, w2=w2, b2=b2)


def _init_conv(key):
    k = jax.random.split(key, 9)
    eln_g, eln_b = _init_ln(k[0], 1)
    we, _ = _init_linear(k[1], 1, EMB, bias=False)        # feature_module_edge
    wl, bl = _init_linear(k[2], EMB, EMB)                 # feature_module_left
    wr, _ = _init_linear(k[3], EMB, EMB, bias=False)      # feature_module_right
    fln_g, fln_b = _init_ln(k[4], EMB)                    # feature_module_final LN
    wf, bf = _init_linear(k[5], EMB, EMB)                 # feature_module_final Linear
    pln_g, pln_b = _init_ln(k[6], EMB)                    # post_conv_module LN
    wo1, bo1 = _init_linear(k[7], 2 * EMB, EMB)           # output_module Linear(128,64)
    wo2, bo2 = _init_linear(k[8], EMB, EMB)               # output_module Linear(64,64)
    return dict(eln_g=eln_g, eln_b=eln_b, we=we, wl=wl, bl=bl, wr=wr,
                fln_g=fln_g, fln_b=fln_b, wf=wf, bf=bf,
                pln_g=pln_g, pln_b=pln_b, wo1=wo1, bo1=bo1, wo2=wo2, bo2=bo2)


def init_params(key):
    ks = jax.random.split(key, 7)
    head_w1, head_b1 = _init_linear(ks[5], EMB, EMB)
    head_w2, _ = _init_linear(ks[6], EMB, 1, bias=False)
    return dict(
        cons_embedding=_init_embedding(ks[0], 4),
        var_embedding=_init_embedding(ks[1], 18),
        conv_v_to_c=_init_conv(ks[2]),
        conv_c_to_v=_init_conv(ks[3]),
        conv_v_to_c2=_init_conv(jax.random.fold_in(ks[2], 1)),
        conv_c_to_v2=_init_conv(jax.random.fold_in(ks[3], 1)),
        output_module=dict(w1=head_w1, b1=head_b1, w2=head_w2),
    )


# ----------------------------------------------------------------------------
# forward pass (mirrors GNNPolicy_position.forward)
# ----------------------------------------------------------------------------
def gnn_policy_forward(params, constraint_features, edge_indices,
                       edge_features, variable_features):
    n_cons = constraint_features.shape[0]
    n_vars = variable_features.shape[0]
    n_edges = edge_features.shape[0]
    # edge_embedding (LayerNorm over a 1-wide feature) outputs exactly its bias
    # regardless of the input; that constant is folded into each conv's message
    # bias, so the raw edge feature values are (correctly) unused.
    del edge_features

    # +1 gives every node table a dedicated dummy row for padded edges; real
    # edges never reference padded rows and padding is sliced off at the end.
    nc_pad = _round_up(n_cons + 1, TILE_N)
    nv_pad = _round_up(n_vars + 1, TILE_N)

    cons = call_embed(params["cons_embedding"], constraint_features, nc_pad)
    varf = call_embed(params["var_embedding"], variable_features, nv_pad)

    cons_idx = edge_indices[0].astype(jnp.int32)
    var_idx = edge_indices[1].astype(jnp.int32)

    # sorted-by-target edge layouts, built once per direction and reused
    v2c = _prepare_edges(var_idx, cons_idx, n_edges, dummy_tgt=n_cons)   # tgt = cons
    c2v = _prepare_edges(cons_idx, var_idx, n_edges, dummy_tgt=n_vars)   # tgt = vars

    cons = bipartite_conv(params["conv_v_to_c"], varf, cons, *v2c, n_edges)
    varf = bipartite_conv(params["conv_c_to_v"], cons, varf, *c2v, n_edges)
    cons = bipartite_conv(params["conv_v_to_c2"], varf, cons, *v2c, n_edges)
    # last conv: policy head fused into its post-module kernel -> [Nv_pad, 1]
    logits = bipartite_conv(params["conv_c_to_v2"], cons, varf, *c2v, n_edges,
                            head=params["output_module"])
    return logits[:n_vars, 0]                             # squeeze(-1), drop padding


# ----------------------------------------------------------------------------
if __name__ == "__main__":
    key = jax.random.PRNGKey(0)
    k_param, k_cons, k_var, k_edge, k_ci, k_vi = jax.random.split(key, 6)

    n_cons, n_vars, n_edges = 16, 32, 200
    constraint_features = jax.random.normal(k_cons, (n_cons, 4), jnp.float32)
    variable_features = jax.random.normal(k_var, (n_vars, 18), jnp.float32)
    edge_features = jax.random.normal(k_edge, (n_edges, 1), jnp.float32)
    edge_indices = jnp.stack([
        jax.random.randint(k_ci, (n_edges,), 0, n_cons),
        jax.random.randint(k_vi, (n_edges,), 0, n_vars),
    ], axis=0).astype(jnp.int32)                          # [2, E]

    params = init_params(k_param)

    out = gnn_policy_forward(params, constraint_features, edge_indices,
                             edge_features, variable_features)
    out = jax.block_until_ready(out)
    assert out.shape == (n_vars,), out.shape
    assert bool(jnp.all(jnp.isfinite(out)))
    print("KERNEL_OK")
</pallas_src>

<mosaic_0001>
module attributes {stable_mosaic.version = 11 : i64} {
  func.func @embed_kernel(%arg0: i32, %arg1: memref<256x4xf32, #tpu.memory_space<vmem>>, %arg2: memref<1x4xf32, #tpu.memory_space<vmem>>, %arg3: memref<1x4xf32, #tpu.memory_space<vmem>>, %arg4: memref<4x64xf32, #tpu.memory_space<vmem>>, %arg5: memref<1x64xf32, #tpu.memory_space<vmem>>, %arg6: memref<64x64xf32, #tpu.memory_space<vmem>>, %arg7: memref<1x64xf32, #tpu.memory_space<vmem>>, %arg8: memref<256x64xf32, #tpu.memory_space<vmem>>) attributes {dimension_semantics = [#tpu.dimension_semantics<parallel>], iteration_bounds = array<i64: 1>, scalar_prefetch = 0 : i64, scratch_operands = 0 : i64, tpu.core_type = #tpu.core_type<tc>, window_params = [{transform_indices = @transform_0, window_bounds = array<i64: 256, 4>}, {pipeline_mode = #tpu.pipeline_mode<synchronous>, transform_indices = @transform_1, window_bounds = array<i64: 1, 4>}, {pipeline_mode = #tpu.pipeline_mode<synchronous>, transform_indices = @transform_2, window_bounds = array<i64: 1, 4>}, {pipeline_mode = #tpu.pipeline_mode<synchronous>, transform_indices = @transform_3, window_bounds = array<i64: 4, 64>}, {pipeline_mode = #tpu.pipeline_mode<synchronous>, transform_indices = @transform_4, window_bounds = array<i64: 1, 64>}, {pipeline_mode = #tpu.pipeline_mode<synchronous>, transform_indices = @transform_5, window_bounds = array<i64: 64, 64>}, {pipeline_mode = #tpu.pipeline_mode<synchronous>, transform_indices = @transform_6, window_bounds = array<i64: 1, 64>}, {transform_indices = @transform_7, window_bounds = array<i64: 256, 64>}]} {
    %c0 = arith.constant 0 : index
    %c0_0 = arith.constant 0 : index
    %0 = vector.load %arg1[%c0, %c0_0] : memref<256x4xf32, #tpu.memory_space<vmem>>, vector<256x4xf32>
    %c0_1 = arith.constant 0 : index
    %c0_2 = arith.constant 0 : index
    %1 = vector.load %arg2[%c0_1, %c0_2] : memref<1x4xf32, #tpu.memory_space<vmem>>, vector<1x4xf32>
    %c0_3 = arith.constant 0 : index
    %c0_4 = arith.constant 0 : index
    %2 = vector.load %arg3[%c0_3, %c0_4] : memref<1x4xf32, #tpu.memory_space<vmem>>, vector<1x4xf32>
    %cst = arith.constant dense<0.000000e+00> : vector<256xf32>
    %3 = vector.multi_reduction <add>, %0, %cst [1] : vector<256x4xf32> to vector<256xf32>
    %4 = vector.shape_cast %3 : vector<256xf32> to vector<256x1xf32>
    %cst_5 = arith.constant 4.000000e+00 : f32
    %5 = vector.broadcast %cst_5 : f32 to vector<256x1xf32>
    %6 = arith.divf %4, %5 : vector<256x1xf32>
    %7 = vector.broadcast %6 : vector<256x1xf32> to vector<256x4xf32>
    %8 = arith.subf %0, %7 : vector<256x4xf32>
    %9 = arith.mulf %8, %8 : vector<256x4xf32>
    %cst_6 = arith.constant dense<0.000000e+00> : vector<256xf32>
    %10 = vector.multi_reduction <add>, %9, %cst_6 [1] : vector<256x4xf32> to vector<256xf32>
    %11 = vector.shape_cast %10 : vector<256xf32> to vector<256x1xf32>
    %cst_7 = arith.constant 4.000000e+00 : f32
    %12 = vector.broadcast %cst_7 : f32 to vector<256x1xf32>
    %13 = arith.divf %11, %12 : vector<256x1xf32>
    %cst_8 = arith.constant 9.99999974E-6 : f32
    %14 = vector.broadcast %cst_8 : f32 to vector<256x1xf32>
    %15 = arith.addf %13, %14 : vector<256x1xf32>
    %16 = math.rsqrt %15 : vector<256x1xf32>
    %17 = vector.broadcast %16 : vector<256x1xf32> to vector<256x4xf32>
    %18 = arith.mulf %8, %17 : vector<256x4xf32>
    %19 = vector.broadcast %1 : vector<1x4xf32> to vector<256x4xf32>
    %20 = arith.mulf %18, %19 : vector<256x4xf32>
    %21 = vector.broadcast %2 : vector<1x4xf32> to vector<256x4xf32>
    %22 = arith.addf %20, %21 : vector<256x4xf32>
    %c0_9 = arith.constant 0 : index
    %c0_10 = arith.constant 0 : index
    %23 = vector.load %arg4[%c0_9, %c0_10] : memref<4x64xf32, #tpu.memory_space<vmem>>, vector<4x64xf32>
    %cst_11 = arith.constant dense<0.000000e+00> : vector<256x64xf32>
    %24 = tpu.matmul %22, %23, %cst_11 {dimension_numbers = #tpu.dot_dimension_numbers<[1], [0], [0], [1], [0, 0, 1, 1], [], []>} : vector<256x4xf32>, vector<4x64xf32>, vector<256x64xf32> -> vector<256x64xf32>
    %c0_12 = arith.constant 0 : index
    %c0_13 = arith.constant 0 : index
    %25 = vector.load %arg5[%c0_12, %c0_13] : memref<1x64xf32, #tpu.memory_space<vmem>>, vector<1x64xf32>
    %26 = vector.broadcast %25 : vector<1x64xf32> to vector<256x64xf32>
    %27 = arith.addf %24, %26 : vector<256x64xf32>
    %cst_14 = arith.constant 0.000000e+00 : f32
    %28 = vector.broadcast %cst_14 : f32 to vector<256x64xf32>
    %29 = arith.maximumf %27, %28 : vector<256x64xf32>
    %c0_15 = arith.constant 0 : index
    %c0_16 = arith.constant 0 : index
    %30 = vector.load %arg6[%c0_15, %c0_16] : memref<64x64xf32, #tpu.memory_space<vmem>>, vector<64x64xf32>
    %cst_17 = arith.constant dense<0.000000e+00> : vector<256x64xf32>
    %31 = tpu.matmul %29, %30, %cst_17 {dimension_numbers = #tpu.dot_dimension_numbers<[1], [0], [0], [1], [0, 0, 1, 1], [], []>} : vector<256x64xf32>, vector<64x64xf32>, vector<256x64xf32> -> vector<256x64xf32>
    %c0_18 = arith.constant 0 : index
    %c0_19 = arith.constant 0 : index
    %32 = vector.load %arg7[%c0_18, %c0_19] : memref<1x64xf32, #tpu.memory_space<vmem>>, vector<1x64xf32>
    %33 = vector.broadcast %32 : vector<1x64xf32> to vector<256x64xf32>
    %34 = arith.addf %31, %33 : vector<256x64xf32>
    %cst_20 = arith.constant 0.000000e+00 : f32
    %35 = vector.broadcast %cst_20 : f32 to vector<256x64xf32>
    %36 = arith.maximumf %34, %35 : vector<256x64xf32>
    %c0_21 = arith.constant 0 : index
    %c0_22 = arith.constant 0 : index
    %37 = vector.load %arg8[%c0_21, %c0_22] : memref<256x64xf32, #tpu.memory_space<vmem>>, vector<256x64xf32>
    tpu.vector_store %arg8[%c0_21, %c0_22], %36 {strides = array<i32>} : memref<256x64xf32, #tpu.memory_space<vmem>>, vector<256x64xf32>,
    return
  }
  func.func @transform_0(%arg0: i32) -> (i32, i32) {
    %c0_i32 = arith.constant 0 : i32
    %c0_i32_0 = arith.constant 0 : i32
    return %arg0, %c0_i32 : i32, i32
  }
  func.func @transform_1(%arg0: i32) -> (i32, i32) {
    %c0_i32 = arith.constant 0 : i32
    %c0_i32_0 = arith.constant 0 : i32
    %c0_i32_1 = arith.constant 0 : i32
    return %c0_i32, %c0_i32_0 : i32, i32
  }
  func.func @transform_2(%arg0: i32) -> (i32, i32) {
    %c0_i32 = arith.constant 0 : i32
    %c0_i32_0 = arith.constant 0 : i32
    %c0_i32_1 = arith.constant 0 : i32
    return %c0_i32, %c0_i32_0 : i32, i32
  }
  func.func @transform_3(%arg0: i32) -> (i32, i32) {
    %c0_i32 = arith.constant 0 : i32
    %c0_i32_0 = arith.constant 0 : i32
    %c0_i32_1 = arith.constant 0 : i32
    return %c0_i32, %c0_i32_0 : i32, i32
  }
  func.func @transform_4(%arg0: i32) -> (i32, i32) {
    %c0_i32 = arith.constant 0 : i32
    %c0_i32_0 = arith.constant 0 : i32
    %c0_i32_1 = arith.constant 0 : i32
    return %c0_i32, %c0_i32_0 : i32, i32
  }
  func.func @transform_5(%arg0: i32) -> (i32, i32) {
    %c0_i32 = arith.constant 0 : i32
    %c0_i32_0 = arith.constant 0 : i32
    %c0_i32_1 = arith.constant 0 : i32
    return %c0_i32, %c0_i32_0 : i32, i32
  }
  func.func @transform_6(%arg0: i32) -> (i32, i32) {
    %c0_i32 = arith.constant 0 : i32
    %c0_i32_0 = arith.constant 0 : i32
    %c0_i32_1 = arith.constant 0 : i32
    return %c0_i32, %c0_i32_0 : i32, i32
  }
  func.func @transform_7(%arg0: i32) -> (i32, i32) {
    %c0_i32 = arith.constant 0 : i32
    %c0_i32_0 = arith.constant 0 : i32
    return %arg0, %c0_i32 : i32, i32
  }
}

</mosaic_0001>

<bundles_post_ra>
// kernel: tpu_custom_call.1
= control target key start
LH: loop header
LB: loop body
LE: loop exit
PB: predicated region body
PF: predicated region fallthrough
CT: control target
= control target key end

     0   :  { %vm60_vm0 = vcmask 31744   ;;  %vm658_vm1 = vcmask 1043456   ;;  %vm934_vm2 = vcmask 523264   ;;  %s2541_s0 = inlined_call_operand.vmem [shape: f32[256,4], index: 0, kind: input, shape index: {}]   ;;  %s2542_s3 = inlined_call_operand.vmem [shape: f32[4,64], index: 3, kind: input, shape index: {}]   ;;  %s2543_s5 = inlined_call_operand.vmem [shape: f32[64,64], index: 5, kind: input, shape index: {}]   ;;  %s2544_s1 = inlined_call_operand.vmem [shape: f32[1,4], index: 1, kind: input, shape index: {}]   ;;  %s2545_s2 = inlined_call_operand.vmem [shape: f32[1,4], index: 2, kind: input, shape index: {}]   ;;  %s2546_s4 = inlined_call_operand.vmem [shape: f32[1,64], index: 4, kind: input, shape index: {}]   ;;  %s2547_s6 = inlined_call_operand.vmem [shape: f32[1,64], index: 6, kind: input, shape index: {}]   ;;  %s2548_s7 = inlined_call_operand.vmem [shape: f32[256,64], index: 7, kind: output, shape index: {}]  }
   0x1   :  { %v1711_v0 = vld [vmem:[%s2541_s0] sm:$0xff]  ;;  %v1716_v1 = vld [vmem:[%s2541_s0 + $0x10] sm:$0xff]  ;;  %v1721_v2 = vld [vmem:[%s2541_s0 + $0x8] sm:$0xff] }
   0x2   :  { %v61_v3 = vsel %vm60_vm0, %v1711_v0, 0.0  ;;  %v67_v4 = vsel %vm60_vm0, %v1716_v1, 0.0  ;;  %v1730_v5 = vld [vmem:[%s2541_s0 + $0x18] sm:$0xff]  ;;  %v64_v6 = vsel %vm60_vm0, %v1721_v2, 0.0  ;;  %v1739_v8 = vld [vmem:[%s2541_s0 + $0x20] sm:$0xff]  ;;  %v1744_v9 = vld [vmem:[%s2541_s0 + $0x28] sm:$0xff] }
   0x3   :  { %62 = vadd.xlane.f32.xlu0 %v61_v3  ;;  %68 = vadd.xlane.f32.xlu1 %v67_v4  ;;  %v70_v7 = vsel %vm60_vm0, %v1730_v5, 0.0  ;;  %v73_v10 = vsel %vm60_vm0, %v1739_v8, 0.0  ;;  %v76_v11 = vsel %vm60_vm0, %v1744_v9, 0.0  ;;  %v1753_v12 = vld [vmem:[%s2541_s0 + $0x30] sm:$0xff]  ;;  %v1758_v13 = vld [vmem:[%s2541_s0 + $0x38] sm:$0xff]  ;;  %v1767_v16 = vld [vmem:[%s2541_s0 + $0x40] sm:$0xff] }
   0x4   :  { %v79_v14 = vsel %vm60_vm0, %v1753_v12, 0.0  ;;  %v82_v15 = vsel %vm60_vm0, %v1758_v13, 0.0  ;;  %v1772_v17 = vld [vmem:[%s2541_s0 + $0x48] sm:$0xff]  ;;  %v85_v18 = vsel %vm60_vm0, %v1767_v16, 0.0  ;;  %v1781_v20 = vld [vmem:[%s2541_s0 + $0x50] sm:$0xff]  ;;  %v1786_v21 = vld [vmem:[%s2541_s0 + $0x58] sm:$0xff] }
   0x5   :  { %v88_v19 = vsel %vm60_vm0, %v1772_v17, 0.0  ;;  %v91_v22 = vsel %vm60_vm0, %v1781_v20, 0.0  ;;  %v94_v23 = vsel %vm60_vm0, %v1786_v21, 0.0  ;;  %v1795_v24 = vld [vmem:[%s2541_s0 + $0x60] sm:$0xff]  ;;  %v1800_v25 = vld [vmem:[%s2541_s0 + $0x68] sm:$0xff]  ;;  %v1809_v28 = vld [vmem:[%s2541_s0 + $0x70] sm:$0xff] }
   0x6   :  { %v97_v26 = vsel %vm60_vm0, %v1795_v24, 0.0  ;;  %v100_v27 = vsel %vm60_vm0, %v1800_v25, 0.0  ;;  %v1814_v29 = vld [vmem:[%s2541_s0 + $0x78] sm:$0xff]  ;;  %v103_v30 = vsel %vm60_vm0, %v1809_v28, 0.0  ;;  %v1823_v32 = vld [vmem:[%s2541_s0 + $0x80] sm:$0xff]  ;;  %v1828_v33 = vld [vmem:[%s2541_s0 + $0x88] sm:$0xff] }
   0x7   :  { %65 = vadd.xlane.f32.xlu0 %v64_v6  ;;  %71 = vadd.xlane.f32.xlu1 %v70_v7  ;;  %v106_v31 = vsel %vm60_vm0, %v1814_v29, 0.0  ;;  %v109_v34 = vsel %vm60_vm0, %v1823_v32, 0.0  ;;  %v112_v35 = vsel %vm60_vm0, %v1828_v33, 0.0  ;;  %v1837_v36 = vld [vmem:[%s2541_s0 + $0x90] sm:$0xff]  ;;  %v1842_v37 = vld [vmem:[%s2541_s0 + $0x98] sm:$0xff]  ;;  %v1851_v40 = vld [vmem:[%s2541_s0 + $0xa0] sm:$0xff] }
   0x8   :  { %v115_v38 = vsel %vm60_vm0, %v1837_v36, 0.0  ;;  %v118_v39 = vsel %vm60_vm0, %v1842_v37, 0.0  ;;  %v1856_v41 = vld [vmem:[%s2541_s0 + $0xa8] sm:$0xff]  ;;  %v121_v42 = vsel %vm60_vm0, %v1851_v40, 0.0  ;;  %v1865_v44 = vld [vmem:[%s2541_s0 + $0xb0] sm:$0xff]  ;;  %v1870_v45 = vld [vmem:[%s2541_s0 + $0xb8] sm:$0xff] }
   0x9   :  { %v124_v43 = vsel %vm60_vm0, %v1856_v41, 0.0  ;;  %v127_v46 = vsel %vm60_vm0, %v1865_v44, 0.0  ;;  %v130_v47 = vsel %vm60_vm0, %v1870_v45, 0.0  ;;  %v1879_v48 = vld [vmem:[%s2541_s0 + $0xc0] sm:$0xff]  ;;  %v1884_v49 = vld [vmem:[%s2541_s0 + $0xc8] sm:$0xff]  ;;  %v1893_v52 = vld [vmem:[%s2541_s0 + $0xd0] sm:$0xff] }
   0xa   :  { %v133_v50 = vsel %vm60_vm0, %v1879_v48, 0.0  ;;  %v136_v51 = vsel %vm60_vm0, %v1884_v49, 0.0  ;;  %v1898_v53 = vld [vmem:[%s2541_s0 + $0xd8] sm:$0xff]  ;;  %v139_v54 = vsel %vm60_vm0, %v1893_v52, 0.0  ;;  %v1907_v56 = vld [vmem:[%s2541_s0 + $0xe0] sm:$0xff]  ;;  %v1912_v57 = vld [vmem:[%s2541_s0 + $0xe8] sm:$0xff] }
   0xb   :  { %74 = vadd.xlane.f32.xlu0 %v73_v10  ;;  %77 = vadd.xlane.f32.xlu1 %v76_v11  ;;  %v142_v55 = vsel %vm60_vm0, %v1898_v53, 0.0  ;;  %v145_v58 = vsel %vm60_vm0, %v1907_v56, 0.0  ;;  %v148_v59 = vsel %vm60_vm0, %v1912_v57, 0.0  ;;  %v1921_v60 = vld [vmem:[%s2541_s0 + $0xf0] sm:$0xff]  ;;  %v1926_v61 = vld [vmem:[%s2541_s0 + $0xf8] sm:$0xff] }
   0xc   :  { %v151_v62 = vsel %vm60_vm0, %v1921_v60, 0.0  ;;  %v154_v63 = vsel %vm60_vm0, %v1926_v61, 0.0 }
   0xf   :  { %80 = vadd.xlane.f32.xlu0 %v79_v14  ;;  %83 = vadd.xlane.f32.xlu1 %v82_v15 }
  0x13   :  { %86 = vadd.xlane.f32.xlu0 %v85_v18  ;;  %89 = vadd.xlane.f32.xlu1 %v88_v19 }
  0x17   :  { %92 = vadd.xlane.f32.xlu0 %v91_v22  ;;  %95 = vadd.xlane.f32.xlu1 %v94_v23 }
  0x1b   :  { %98 = vadd.xlane.f32.xlu0 %v97_v26  ;;  %101 = vadd.xlane.f32.xlu1 %v100_v27 }
  0x1f   :  { %104 = vadd.xlane.f32.xlu0 %v103_v30  ;;  %107 = vadd.xlane.f32.xlu1 %v106_v31 }
  0x23   :  { %110 = vadd.xlane.f32.xlu0 %v109_v34  ;;  %113 = vadd.xlane.f32.xlu1 %v112_v35 }
  0x27   :  { %116 = vadd.xlane.f32.xlu0 %v115_v38  ;;  %119 = vadd.xlane.f32.xlu1 %v118_v39 }
  0x2b   :  { %122 = vadd.xlane.f32.xlu0 %v121_v42  ;;  %125 = vadd.xlane.f32.xlu1 %v124_v43 }
  0x2f   :  { %128 = vadd.xlane.f32.xlu0 %v127_v46  ;;  %131 = vadd.xlane.f32.xlu1 %v130_v47 }
  0x33   :  { %134 = vadd.xlane.f32.xlu0 %v133_v50  ;;  %137 = vadd.xlane.f32.xlu1 %v136_v51 }
  0x37   :  { %140 = vadd.xlane.f32.xlu0 %v139_v54  ;;  %143 = vadd.xlane.f32.xlu1 %v142_v55 }
  0x3b   :  { %146 = vadd.xlane.f32.xlu0 %v145_v58  ;;  %149 = vadd.xlane.f32.xlu1 %v148_v59 }
  0x3f   :  { %152 = vadd.xlane.f32.xlu0 %v151_v62  ;;  %155 = vadd.xlane.f32.xlu1 %v154_v63 }
  0x90   :  { %v63_v3 = vpop.xlane.xlu0 %62  ;;  %v69_v4 = vpop.xlane.xlu1 %68 }
  0x91   :  { %v158_v6 = vmul.f32 0.25, %v63_v3  ;;  %v160_v7 = vmul.f32 0.25, %v69_v4 }
  0x93   :  { %v1933_v10 = vsub.f32 %v1711_v0, %v158_v6  ;;  %v1936_v11 = vsub.f32 %v1716_v1, %v160_v7 }
  0x94   :  { %v66_v14 = vpop.xlane.xlu0 %65  ;;  %v72_v15 = vpop.xlane.xlu1 %71 }
  0x95   :  { %v159_v18 = vmul.f32 0.25, %v66_v14  ;;  %v161_v19 = vmul.f32 0.25, %v72_v15  ;;  %v222_v22 = vmul.f32 %v1933_v10, %v1933_v10  ;;  %v224_v23 = vmul.f32 %v1936_v11, %v1936_v11 }
  0x97   :  { %v1943_v26 = vsub.f32 %v1721_v2, %v159_v18  ;;  %v1946_v27 = vsub.f32 %v1730_v5, %v161_v19  ;;  %v254_v0 = vsel %vm60_vm0, %v222_v22, 0.0  ;;  %v260_v31 = vsel %vm60_vm0, %v224_v23, 0.0 }
  0x98   :  { %255 = vadd.xlane.f32.xlu0 %v254_v0  ;;  %v75_v1 = vpop.xlane.xlu0 %74  ;;  %v78_v30 = vpop.xlane.xlu1 %77 }
  0x99   :  { %v162_v34 = vmul.f32 0.25, %v75_v1  ;;  %v163_v35 = vmul.f32 0.25, %v78_v30  ;;  %v223_v38 = vmul.f32 %v1943_v26, %v1943_v26  ;;  %v225_v39 = vmul.f32 %v1946_v27, %v1946_v27 }
  0x9b   :  { %v1955_v2 = vsub.f32 %v1739_v8, %v162_v34  ;;  %v1958_v5 = vsub.f32 %v1744_v9, %v163_v35  ;;  %v257_v42 = vsel %vm60_vm0, %v223_v38, 0.0  ;;  %v263_v47 = vsel %vm60_vm0, %v225_v39, 0.0 }
  0x9c   :  { %261 = vadd.xlane.f32.xlu0 %v260_v31  ;;  %258 = vadd.xlane.f32.xlu1 %v257_v42  ;;  %v81_v43 = vpop.xlane.xlu0 %80  ;;  %v84_v46 = vpop.xlane.xlu1 %83 }
  0x9d   :  { %v164_v50 = vmul.f32 0.25, %v81_v43  ;;  %v165_v51 = vmul.f32 0.25, %v84_v46  ;;  %v226_v54 = vmul.f32 %v1955_v2, %v1955_v2  ;;  %v227_v8 = vmul.f32 %v1958_v5, %v1958_v5 }
  0x9f   :  { %v1967_v55 = vsub.f32 %v1753_v12, %v164_v50  ;;  %v1970_v9 = vsub.f32 %v1758_v13, %v165_v51  ;;  %v266_v58 = vsel %vm60_vm0, %v226_v54, 0.0  ;;  %v269_v63 = vsel %vm60_vm0, %v227_v8, 0.0 }
  0xa0   :  { %264 = vadd.xlane.f32.xlu1 %v263_v47  ;;  %267 = vadd.xlane.f32.xlu0 %v266_v58  ;;  %v87_v59 = vpop.xlane.xlu0 %86  ;;  %v90_v62 = vpop.xlane.xlu1 %89 }
  0xa1   :  { %v166_v3 = vmul.f32 0.25, %v87_v59  ;;  %v167_v4 = vmul.f32 0.25, %v90_v62  ;;  %v228_v6 = vmul.f32 %v1967_v55, %v1967_v55  ;;  %v229_v12 = vmul.f32 %v1970_v9, %v1970_v9 }
  0xa3   :  { %v1979_v7 = vsub.f32 %v1767_v16, %v166_v3  ;;  %v1982_v13 = vsub.f32 %v1772_v17, %v167_v4  ;;  %v272_v14 = vsel %vm60_vm0, %v228_v6, 0.0  ;;  %v275_v19 = vsel %vm60_vm0, %v229_v12, 0.0 }
  0xa4   :  { %270 = vadd.xlane.f32.xlu1 %v269_v63  ;;  %273 = vadd.xlane.f32.xlu0 %v272_v14  ;;  %v93_v15 = vpop.xlane.xlu0 %92  ;;  %v96_v18 = vpop.xlane.xlu1 %95 }
  0xa5   :  { %v168_v22 = vmul.f32 0.25, %v93_v15  ;;  %v169_v23 = vmul.f32 0.25, %v96_v18  ;;  %v230_v0 = vmul.f32 %v1979_v7, %v1979_v7  ;;  %v231_v16 = vmul.f32 %v1982_v13, %v1982_v13 }
  0xa7   :  { %v1991_v1 = vsub.f32 %v1781_v20, %v168_v22  ;;  %v1994_v17 = vsub.f32 %v1786_v21, %v169_v23  ;;  %v278_v30 = vsel %vm60_vm0, %v230_v0, 0.0  ;;  %v281_v35 = vsel %vm60_vm0, %v231_v16, 0.0 }
  0xa8   :  { %276 = vadd.xlane.f32.xlu1 %v275_v19  ;;  %279 = vadd.xlane.f32.xlu0 %v278_v30  ;;  %v99_v31 = vpop.xlane.xlu0 %98  ;;  %v102_v34 = vpop.xlane.xlu1 %101 }
  0xa9   :  { %v170_v38 = vmul.f32 0.25, %v99_v31  ;;  %v171_v39 = vmul.f32 0.25, %v102_v34  ;;  %v232_v42 = vmul.f32 %v1991_v1, %v1991_v1  ;;  %v233_v20 = vmul.f32 %v1994_v17, %v1994_v17 }
  0xab   :  { %v2003_v43 = vsub.f32 %v1795_v24, %v170_v38  ;;  %v2006_v21 = vsub.f32 %v1800_v25, %v171_v39  ;;  %v284_v46 = vsel %vm60_vm0, %v232_v42, 0.0  ;;  %v287_v51 = vsel %vm60_vm0, %v233_v20, 0.0 }
  0xac   :  { %282 = vadd.xlane.f32.xlu1 %v281_v35  ;;  %285 = vadd.xlane.f32.xlu0 %v284_v46  ;;  %v105_v47 = vpop.xlane.xlu0 %104  ;;  %v108_v50 = vpop.xlane.xlu1 %107 }
  0xad   :  { %v172_v54 = vmul.f32 0.25, %v105_v47  ;;  %v173_v8 = vmul.f32 0.25, %v108_v50  ;;  %v234_v58 = vmul.f32 %v2003_v43, %v2003_v43  ;;  %v235_v24 = vmul.f32 %v2006_v21, %v2006_v21 }
  0xaf   :  { %v2015_v59 = vsub.f32 %v1809_v28, %v172_v54  ;;  %v2018_v25 = vsub.f32 %v1814_v29, %v173_v8  ;;  %v290_v62 = vsel %vm60_vm0, %v234_v58, 0.0  ;;  %v293_v4 = vsel %vm60_vm0, %v235_v24, 0.0 }
  0xb0   :  { %288 = vadd.xlane.f32.xlu1 %v287_v51  ;;  %291 = vadd.xlane.f32.xlu0 %v290_v62  ;;  %v111_v63 = vpop.xlane.xlu0 %110  ;;  %v114_v3 = vpop.xlane.xlu1 %113 }
  0xb1   :  { %v174_v6 = vmul.f32 0.25, %v111_v63  ;;  %v175_v12 = vmul.f32 0.25, %v114_v3  ;;  %v236_v14 = vmul.f32 %v2015_v59, %v2015_v59  ;;  %v237_v28 = vmul.f32 %v2018_v25, %v2018_v25 }
  0xb3   :  { %v2027_v15 = vsub.f32 %v1823_v32, %v174_v6  ;;  %v2030_v29 = vsub.f32 %v1828_v33, %v175_v12  ;;  %v296_v18 = vsel %vm60_vm0, %v236_v14, 0.0  ;;  %v299_v23 = vsel %vm60_vm0, %v237_v28, 0.0 }
  0xb4   :  { %294 = vadd.xlane.f32.xlu1 %v293_v4  ;;  %297 = vadd.xlane.f32.xlu0 %v296_v18  ;;  %v117_v19 = vpop.xlane.xlu0 %116  ;;  %v120_v22 = vpop.xlane.xlu1 %119 }
  0xb5   :  { %v176_v0 = vmul.f32 0.25, %v117_v19  ;;  %v177_v16 = vmul.f32 0.25, %v120_v22  ;;  %v238_v30 = vmul.f32 %v2027_v15, %v2027_v15  ;;  %v239_v32 = vmul.f32 %v2030_v29, %v2030_v29 }
  0xb7   :  { %v2039_v31 = vsub.f32 %v1837_v36, %v176_v0  ;;  %v2042_v33 = vsub.f32 %v1842_v37, %v177_v16  ;;  %v302_v34 = vsel %vm60_vm0, %v238_v30, 0.0  ;;  %v305_v39 = vsel %vm60_vm0, %v239_v32, 0.0 }
  0xb8   :  { %300 = vadd.xlane.f32.xlu1 %v299_v23  ;;  %303 = vadd.xlane.f32.xlu0 %v302_v34  ;;  %v123_v35 = vpop.xlane.xlu0 %122  ;;  %v126_v38 = vpop.xlane.xlu1 %125 }
  0xb9   :  { %v178_v42 = vmul.f32 0.25, %v123_v35  ;;  %v179_v20 = vmul.f32 0.25, %v126_v38  ;;  %v240_v46 = vmul.f32 %v2039_v31, %v2039_v31  ;;  %v241_v36 = vmul.f32 %v2042_v33, %v2042_v33 }
  0xbb   :  { %v2051_v47 = vsub.f32 %v1851_v40, %v178_v42  ;;  %v2054_v37 = vsub.f32 %v1856_v41, %v179_v20  ;;  %v308_v50 = vsel %vm60_vm0, %v240_v46, 0.0  ;;  %v311_v8 = vsel %vm60_vm0, %v241_v36, 0.0  ;;  %v554_v41 = vld [vmem:[%s2542_s3] sm:$0xf] }
  0xbc   :  { %306 = vadd.xlane.f32.xlu1 %v305_v39  ;;  %309 = vadd.xlane.f32.xlu0 %v308_v50  ;;  %v129_v51 = vpop.xlane.xlu0 %128  ;;  %v132_v54 = vpop.xlane.xlu1 %131 }
  0xbd   :  { %v180_v58 = vmul.f32 0.25, %v129_v51  ;;  %v181_v24 = vmul.f32 0.25, %v132_v54  ;;  %v242_v62 = vmul.f32 %v2051_v47, %v2051_v47  ;;  %v243_v40 = vmul.f32 %v2054_v37, %v2054_v37  ;;  %1466 = vmatprep.subr.msk.mxu0 %vm658_vm1, %v554_v41 }
  0xbe   :  { %1467 = vmatpush3.msk.msra.mxu0 %vm658_vm1, %v554_v41 }
  0xbf   :  { %v2066_v63 = vsub.f32 %v1865_v44, %v180_v58  ;;  %v2069_v3 = vsub.f32 %v1870_v45, %v181_v24  ;;  %v314_v4 = vsel %vm60_vm0, %v242_v62, 0.0  ;;  %v317_v14 = vsel %vm60_vm0, %v243_v40, 0.0 }
  0xc0   :  { %312 = vadd.xlane.f32.xlu1 %v311_v8  ;;  %315 = vadd.xlane.f32.xlu0 %v314_v4  ;;  %v135_v6 = vpop.xlane.xlu0 %134  ;;  %v138_v12 = vpop.xlane.xlu1 %137 }
  0xc1   :  { %v182_v28 = vmul.f32 0.25, %v135_v6  ;;  %v183_v18 = vmul.f32 0.25, %v138_v12  ;;  %v244_v19 = vmul.f32 %v2066_v63, %v2066_v63  ;;  %v245_v44 = vmul.f32 %v2069_v3, %v2069_v3 }
  0xc3   :  { %v2078_v45 = vsub.f32 %v1879_v48, %v182_v28  ;;  %v2081_v22 = vsub.f32 %v1884_v49, %v183_v18  ;;  %v320_v23 = vsel %vm60_vm0, %v244_v19, 0.0  ;;  %v323_v30 = vsel %vm60_vm0, %v245_v44, 0.0  ;;  %v920_v44 = vld [vmem:[%s2543_s5 + $0x8] sm:$0xff] }
  0xc4   :  { %318 = vadd.xlane.f32.xlu1 %v317_v14  ;;  %321 = vadd.xlane.f32.xlu0 %v320_v23  ;;  %v141_v0 = vpop.xlane.xlu0 %140  ;;  %v144_v16 = vpop.xlane.xlu1 %143  ;;  %v921_v23 = vld [vmem:[%s2543_s5 + $0x10] sm:$0xff] }
  0xc5   :  { %v184_v32 = vmul.f32 0.25, %v141_v0  ;;  %v185_v34 = vmul.f32 0.25, %v144_v16  ;;  %v246_v35 = vmul.f32 %v2078_v45, %v2078_v45  ;;  %v247_v48 = vmul.f32 %v2081_v22, %v2081_v22  ;;  %v922_v16 = vld [vmem:[%s2543_s5 + $0x18] sm:$0xff] }
  0xc7   :  { %v2090_v38 = vsub.f32 %v1893_v52, %v184_v32  ;;  %v2093_v49 = vsub.f32 %v1898_v53, %v185_v34  ;;  %v326_v39 = vsel %vm60_vm0, %v246_v35, 0.0  ;;  %v329_v46 = vsel %vm60_vm0, %v247_v48, 0.0  ;;  %v923_v32 = vld [vmem:[%s2543_s5 + $0x20] sm:$0xff]  ;;  %v924_v34 = vld [vmem:[%s2543_s5 + $0x28] sm:$0xff] }
  0xc8   :  { %324 = vadd.xlane.f32.xlu1 %v323_v30  ;;  %327 = vadd.xlane.f32.xlu0 %v326_v39  ;;  %v147_v42 = vpop.xlane.xlu0 %146  ;;  %v150_v20 = vpop.xlane.xlu1 %149  ;;  %v2143_v30 = vpack.c.bf16 %v922_v16, %v921_v23  ;;  %v2153_v35 = vpack.c.bf16 %v924_v34, %v923_v32  ;;  %v2167_v34 = vld [vmem:[%s2545_s2] ss:$0 sm:$0xff] }
  0xc9   :  { %v186_v36 = vmul.f32 0.25, %v147_v42  ;;  %v187_v50 = vmul.f32 0.25, %v150_v20  ;;  %v248_v51 = vmul.f32 %v2090_v38, %v2090_v38  ;;  %v249_v52 = vmul.f32 %v2093_v49, %v2093_v49 }
  0xcb   :  { %v2102_v54 = vsub.f32 %v1907_v56, %v186_v36  ;;  %v2105_v53 = vsub.f32 %v1912_v57, %v187_v50  ;;  %v332_v8 = vsel %vm60_vm0, %v248_v51, 0.0  ;;  %v335_v62 = vsel %vm60_vm0, %v249_v52, 0.0 }
  0xcc   :  { %330 = vadd.xlane.f32.xlu1 %v329_v46  ;;  %333 = vadd.xlane.f32.xlu0 %v332_v8  ;;  %v153_v58 = vpop.xlane.xlu0 %152  ;;  %v156_v24 = vpop.xlane.xlu1 %155 }
  0xcd   :  { %v188_v40 = vmul.f32 0.25, %v153_v58  ;;  %v189_v41 = vmul.f32 0.25, %v156_v24  ;;  %v250_v4 = vmul.f32 %v2102_v54, %v2102_v54  ;;  %v251_v56 = vmul.f32 %v2105_v53, %v2105_v53 }
  0xcf   :  { %v2114_v6 = vsub.f32 %v1921_v60, %v188_v40  ;;  %v2117_v57 = vsub.f32 %v1926_v61, %v189_v41  ;;  %v338_v12 = vsel %vm60_vm0, %v250_v4, 0.0  ;;  %v341_v14 = vsel %vm60_vm0, %v251_v56, 0.0  ;;  %v919_v61 = vld [vmem:[%s2543_s5] sm:$0xff] }
  0xd0   :  { %336 = vadd.xlane.f32.xlu1 %v335_v62  ;;  %339 = vadd.xlane.f32.xlu0 %v338_v12  ;;  %v2136_v0 = vpack.c.bf16 %v920_v44, %v919_v61 }
  0xd1   :  { %v252_v28 = vmul.f32 %v2114_v6, %v2114_v6  ;;  %v253_v18 = vmul.f32 %v2117_v57, %v2117_v57 }
  0xd2   :  { %1581 = vmatprep.subr.bf16.mxu0 %v2136_v0  ;;  %1596 = vmatprep.subr.bf16.mxu1 %v2136_v0 }
  0xd3   :  { %v344_v19 = vsel %vm60_vm0, %v252_v28, 0.0  ;;  %v347_v60 = vsel %vm60_vm0, %v253_v18, 0.0  ;;  %1600 = vmatpush3.bf16.msra.mxu1 %v2136_v0 }
  0xd4   :  { %342 = vadd.xlane.f32.xlu1 %v341_v14  ;;  %345 = vadd.xlane.f32.xlu0 %v344_v19 }
  0xd5   :  { %1597 = vmatprep.subr.bf16.mxu1 %v2143_v30 }
  0xd7   :  { %1601 = vmatpush3.bf16.msra.mxu1 %v2143_v30 }
  0xd8   :  { %348 = vadd.xlane.f32.xlu1 %v347_v60  ;;  %1598 = vmatprep.subr.bf16.mxu1 %v2153_v35  ;;  %v2161_v60 = vld [vmem:[%s2544_s1] ss:$0 sm:$0xff] }
  0xdb   :  { %1602 = vmatpush3.bf16.msra.mxu1 %v2153_v35 }
 0x125   :  { %v256_v48 = vpop.xlane.xlu0 %255 }
 0x126   :  { %v350_v39 = vmul.f32 0.25, %v256_v48 }
 0x128   :  { %v382_v42 = vadd.f32 1e-05, %v350_v39 }
 0x129   :  { %v259_v20 = vpop.xlane.xlu1 %258  ;;  %v262_v46 = vpop.xlane.xlu0 %261 }
 0x12a   :  { %1604 = vrsqrt.f32 %v382_v42  ;;  %v351_v36 = vmul.f32 0.25, %v259_v20  ;;  %v352_v50 = vmul.f32 0.25, %v262_v46 }
 0x12c   :  { %v383_v51 = vadd.f32 1e-05, %v351_v36  ;;  %v384_v52 = vadd.f32 1e-05, %v352_v50 }
 0x12d   :  { %v265_v8 = vpop.xlane.xlu1 %264  ;;  %v268_v58 = vpop.xlane.xlu0 %267 }
 0x12e   :  { %1606 = vrsqrt.f32 %v383_v51  ;;  %v353_v24 = vmul.f32 0.25, %v265_v8  ;;  %v354_v62 = vmul.f32 0.25, %v268_v58 }
 0x12f   :  { %1608 = vrsqrt.f32 %v384_v52 }
 0x130   :  { %v385_v40 = vadd.f32 1e-05, %v353_v24  ;;  %v386_v41 = vadd.f32 1e-05, %v354_v62 }
 0x131   :  { %v271_v4 = vpop.xlane.xlu1 %270  ;;  %v274_v56 = vpop.xlane.xlu0 %273 }
 0x132   :  { %1610 = vrsqrt.f32 %v385_v40  ;;  %v355_v12 = vmul.f32 0.25, %v271_v4  ;;  %v356_v14 = vmul.f32 0.25, %v274_v56 }
 0x133   :  { %1612 = vrsqrt.f32 %v386_v41 }
 0x134   :  { %v1605_v28 = vpop.eup %1604  ;;  %v387_v18 = vadd.f32 1e-05, %v355_v12  ;;  %v388_v19 = vadd.f32 1e-05, %v356_v14 }
 0x135   :  { %v277_v61 = vpop.xlane.xlu1 %276  ;;  %v280_v44 = vpop.xlane.xlu0 %279  ;;  %v446_v23 = vmul.f32 %v1605_v28, %v1933_v10 }
 0x136   :  { %1614 = vrsqrt.f32 %v387_v18  ;;  %v357_v16 = vmul.f32 0.25, %v277_v61  ;;  %v358_v32 = vmul.f32 0.25, %v280_v44 }
 0x137   :  { %1616 = vrsqrt.f32 %v388_v19  ;;  %v484_v48 = vmul.f32 %v2161_v60, %v446_v23 }
 0x138   :  { %v1607_v39 = vpop.eup %1606  ;;  %v389_v42 = vadd.f32 1e-05, %v357_v16  ;;  %v390_v20 = vadd.f32 1e-05, %v358_v32 }
 0x139   :  { %v1609_v46 = vpop.eup %1608  ;;  %v283_v36 = vpop.xlane.xlu1 %282  ;;  %v522_v51 = vadd.f32 %v2167_v34, %v484_v48  ;;  %v447_v10 = vmul.f32 %v1607_v39, %v1943_v26 }
 0x13a   :  { %v286_v50 = vpop.xlane.xlu0 %285  ;;  %1618 = vrsqrt.f32 %v389_v42  ;;  %v359_v52 = vmul.f32 0.25, %v283_v36  ;;  %v448_v58 = vmul.f32 %v1609_v46, %v1936_v11 }
 0x13b   :  { %v360_v8 = vmul.f32 0.25, %v286_v50  ;;  %1620 = vrsqrt.f32 %v390_v20  ;;  %1468 = vmatprep.mubr.msk.f32.mxu0 %vm60_vm0, %v522_v51  ;;  %v485_v24 = vmul.f32 %v2161_v60, %v447_v10 }
 0x13c   :  { %v1611_v62 = vpop.eup %1610  ;;  %v391_v40 = vadd.f32 1e-05, %v359_v52  ;;  %v486_v4 = vmul.f32 %v2161_v60, %v448_v58 }
 0x13d   :  { %v392_v41 = vadd.f32 1e-05, %v360_v8  ;;  %v1613_v56 = vpop.eup %1612  ;;  %v289_v12 = vpop.xlane.xlu1 %288  ;;  %v523_v26 = vadd.f32 %v2167_v34, %v485_v24  ;;  %v449_v28 = vmul.f32 %v1611_v62, %v1946_v27 }
 0x13e   :  { %v292_v14 = vpop.xlane.xlu0 %291  ;;  %1622 = vrsqrt.f32 %v391_v40  ;;  %v361_v18 = vmul.f32 0.25, %v289_v12  ;;  %v524_v19 = vadd.f32 %v2167_v34, %v486_v4  ;;  %v450_v44 = vmul.f32 %v1613_v56, %v1955_v2 }
 0x13f   :  { %v362_v11 = vmul.f32 0.25, %v292_v14  ;;  %1624 = vrsqrt.f32 %v392_v41  ;;  %1469 = vmatmul.mubr.msk.f32.vlgmr.msra.gmra.mrb[0].mxu0 %vm60_vm0, %v523_v26  ;;  %v487_v61 = vmul.f32 %v2161_v60, %v449_v28 }
 0x140   :  { %v1615_v23 = vpop.eup %1614  ;;  %v393_v16 = vadd.f32 1e-05, %v361_v18  ;;  %1471 = vmatprep.mubr.msk.f32.mxu0 %vm60_vm0, %v524_v19  ;;  %1583 = vmatpush3.bf16.msra.mxu0 %v2136_v0  ;;  %v488_v20 = vmul.f32 %v2161_v60, %v450_v44 }
 0x141   :  { %v394_v32 = vadd.f32 1e-05, %v362_v11  ;;  %v1617_v27 = vpop.eup %1616  ;;  %v295_v48 = vpop.xlane.xlu1 %294  ;;  %v525_v42 = vadd.f32 %v2167_v34, %v487_v61  ;;  %v451_v46 = vmul.f32 %v1615_v23, %v1958_v5  ;;  %1585 = vmatprep.subr.bf16.mxu0 %v2143_v30 }
 0x142   :  { %v298_v39 = vpop.xlane.xlu0 %297  ;;  %1626 = vrsqrt.f32 %v393_v16  ;;  %v363_v2 = vmul.f32 0.25, %v295_v48  ;;  %v452_v50 = vmul.f32 %v1617_v27, %v1967_v55  ;;  %v526_v0 = vadd.f32 %v2167_v34, %v488_v20 }
 0x143   :  { %v364_v36 = vmul.f32 0.25, %v298_v39  ;;  %1628 = vrsqrt.f32 %v394_v32  ;;  %1472 = vmatmul.mubr.msk.f32.gmra.mrb[2].mxu0 %vm60_vm0, %v525_v42  ;;  %v489_v51 = vmul.f32 %v2161_v60, %v451_v46 }
 0x144   :  { %v1619_v10 = vpop.eup %1618  ;;  %v395_v52 = vadd.f32 1e-05, %v363_v2  ;;  %v490_v58 = vmul.f32 %v2161_v60, %v452_v50  ;;  %1587 = vmatpush3.bf16.msra.mxu0 %v2143_v30  ;;  %1474 = vmatprep.mubr.msk.f32.mxu0 %vm60_vm0, %v526_v0 }
 0x145   :  { %v396_v8 = vadd.f32 1e-05, %v364_v36  ;;  %v1621_v5 = vpop.eup %1620  ;;  %v301_v24 = vpop.xlane.xlu1 %300  ;;  %v527_v55 = vadd.f32 %v2167_v34, %v489_v51  ;;  %v453_v40 = vmul.f32 %v1619_v10, %v1970_v9  ;;  %1589 = vmatprep.subr.bf16.mxu0 %v2153_v35 }
 0x146   :  { %v304_v62 = vpop.xlane.xlu0 %303  ;;  %1630 = vrsqrt.f32 %v395_v52  ;;  %v365_v41 = vmul.f32 0.25, %v301_v24  ;;  %v528_v56 = vadd.f32 %v2167_v34, %v490_v58  ;;  %v454_v12 = vmul.f32 %v1621_v5, %v1979_v7 }
 0x147   :  { %v366_v4 = vmul.f32 0.25, %v304_v62  ;;  %1632 = vrsqrt.f32 %v396_v8  ;;  %1475 = vmatmul.mubr.msk.f32.gmra.mrb[4].mxu0 %vm60_vm0, %v527_v55  ;;  %v491_v30 = vmul.f32 %v2161_v60, %v453_v40 }
 0x148   :  { %v1623_v14 = vpop.eup %1622  ;;  %v397_v26 = vadd.f32 1e-05, %v365_v41  ;;  %1477 = vmatprep.mubr.msk.f32.mxu0 %vm60_vm0, %v528_v56  ;;  %1591 = vmatpush3.bf16.msra.mxu0 %v2153_v35  ;;  %v492_v61 = vmul.f32 %v2161_v60, %v454_v12 }
 0x149   :  { %v398_v28 = vadd.f32 1e-05, %v366_v4  ;;  %v1625_v9 = vpop.eup %1624  ;;  %v307_v18 = vpop.xlane.xlu1 %306  ;;  %v529_v19 = vadd.f32 %v2167_v34, %v491_v30  ;;  %v455_v44 = vmul.f32 %v1623_v14, %v1982_v13 }
 0x14a   :  { %v310_v11 = vpop.xlane.xlu0 %309  ;;  %1634 = vrsqrt.f32 %v397_v26  ;;  %v367_v23 = vmul.f32 0.25, %v307_v18  ;;  %v456_v7 = vmul.f32 %v1625_v9, %v1991_v1  ;;  %v530_v32 = vadd.f32 %v2167_v34, %v492_v61 }
 0x14b   :  { %v368_v16 = vmul.f32 0.25, %v310_v11  ;;  %1636 = vrsqrt.f32 %v398_v28  ;;  %1478 = vmatmul.mubr.msk.f32.gmra.mrb[6].mxu0 %vm60_vm0, %v529_v19  ;;  %v493_v35 = vmul.f32 %v2161_v60, %v455_v44 }
 0x14c   :  { %v1627_v27 = vpop.eup %1626  ;;  %v399_v48 = vadd.f32 1e-05, %v367_v23  ;;  %v494_v42 = vmul.f32 %v2161_v60, %v456_v7  ;;  %1480 = vmatprep.mubr.msk.f32.mxu0 %vm60_vm0, %v530_v32 }
 0x14d   :  { %v400_v39 = vadd.f32 1e-05, %v368_v16  ;;  %v1629_v20 = vpop.eup %1628  ;;  %v313_v13 = vpop.xlane.xlu1 %312  ;;  %v531_v2 = vadd.f32 %v2167_v34, %v493_v35  ;;  %v457_v1 = vmul.f32 %v1627_v27, %v1994_v17 }
 0x14e   :  { %v316_v46 = vpop.xlane.xlu0 %315  ;;  %1638 = vrsqrt.f32 %v399_v48  ;;  %v369_v36 = vmul.f32 0.25, %v313_v13  ;;  %v532_v0 = vadd.f32 %v2167_v34, %v494_v42  ;;  %v458_v10 = vmul.f32 %v1629_v20, %v2003_v43 }
 0x14f   :  { %v370_v50 = vmul.f32 0.25, %v316_v46  ;;  %1640 = vrsqrt.f32 %v400_v39  ;;  %1481 = vmatmul.mubr.msk.f32.gmra.mrb[8].mxu0 %vm60_vm0, %v531_v2  ;;  %v495_v51 = vmul.f32 %v2161_v60, %v457_v1 }
 0x150   :  { %v1631_v52 = vpop.eup %1630  ;;  %v401_v8 = vadd.f32 1e-05, %v369_v36  ;;  %1483 = vmatprep.mubr.msk.f32.mxu0 %vm60_vm0, %v532_v0  ;;  %v496_v55 = vmul.f32 %v2161_v60, %v458_v10 }
 0x151   :  { %v402_v58 = vadd.f32 1e-05, %v370_v50  ;;  %v1633_v5 = vpop.eup %1632  ;;  %v319_v24 = vpop.xlane.xlu1 %318  ;;  %v533_v62 = vadd.f32 %v2167_v34, %v495_v51  ;;  %v459_v40 = vmul.f32 %v1631_v52, %v2006_v21 }
 0x152   :  { %v322_v17 = vpop.xlane.xlu0 %321  ;;  %1642 = vrsqrt.f32 %v401_v8  ;;  %v371_v41 = vmul.f32 0.25, %v319_v24  ;;  %v460_v56 = vmul.f32 %v1633_v5, %v2015_v59  ;;  %v534_v43 = vadd.f32 %v2167_v34, %v496_v55 }
 0x153   :  { %v372_v4 = vmul.f32 0.25, %v322_v17  ;;  %1644 = vrsqrt.f32 %v402_v58  ;;  %1484 = vmatmul.mubr.msk.f32.gmra.mrb[10].mxu0 %vm60_vm0, %v533_v62  ;;  %v497_v30 = vmul.f32 %v2161_v60, %v459_v40 }
 0x154   :  { %v1635_v12 = vpop.eup %1634  ;;  %v403_v14 = vadd.f32 1e-05, %v371_v41  ;;  %v498_v28 = vmul.f32 %v2161_v60, %v460_v56  ;;  %1486 = vmatprep.mubr.msk.f32.mxu0 %vm60_vm0, %v534_v43 }
 0x155   :  { %v404_v26 = vadd.f32 1e-05, %v372_v4  ;;  %v1637_v9 = vpop.eup %1636  ;;  %v325_v21 = vpop.xlane.xlu1 %324  ;;  %v535_v11 = vadd.f32 %v2167_v34, %v497_v30  ;;  %v461_v59 = vmul.f32 %v1635_v12, %v2018_v25 }
 0x156   :  { %v328_v18 = vpop.xlane.xlu0 %327  ;;  %1646 = vrsqrt.f32 %v403_v14  ;;  %v373_v19 = vmul.f32 0.25, %v325_v21  ;;  %v536_v44 = vadd.f32 %v2167_v34, %v498_v28  ;;  %v462_v16 = vmul.f32 %v1637_v9, %v2027_v15 }
 0x157   :  { %v374_v61 = vmul.f32 0.25, %v328_v18  ;;  %1648 = vrsqrt.f32 %v404_v26  ;;  %1487 = vmatmul.mubr.msk.f32.gmra.mrb[12].mxu0 %vm60_vm0, %v535_v11  ;;  %v499_v23 = vmul.f32 %v2161_v60, %v461_v59 }
 0x158   :  { %v1639_v7 = vpop.eup %1638  ;;  %v405_v32 = vadd.f32 1e-05, %v373_v19  ;;  %1489 = vmatprep.mubr.msk.f32.mxu0 %vm60_vm0, %v536_v44  ;;  %v500_v42 = vmul.f32 %v2161_v60, %v462_v16 }
 0x159   :  { %v406_v35 = vadd.f32 1e-05, %v374_v61  ;;  %v1641_v27 = vpop.eup %1640  ;;  %v331_v48 = vpop.xlane.xlu1 %330  ;;  %v537_v39 = vadd.f32 %v2167_v34, %v499_v23  ;;  %v463_v20 = vmul.f32 %v1639_v7, %v2030_v29 }
 0x15a   :  { %v334_v25 = vpop.xlane.xlu0 %333  ;;  %1650 = vrsqrt.f32 %v405_v32  ;;  %v375_v13 = vmul.f32 0.25, %v331_v48  ;;  %v464_v2 = vmul.f32 %v1641_v27, %v2039_v31  ;;  %v538_v15 = vadd.f32 %v2167_v34, %v500_v42 }
 0x15b   :  { %v376_v46 = vmul.f32 0.25, %v334_v25  ;;  %1652 = vrsqrt.f32 %v406_v35  ;;  %1490 = vmatmul.mubr.msk.f32.gmra.mrb[14].mxu0 %vm60_vm0, %v537_v39  ;;  %v501_v1 = vmul.f32 %v2161_v60, %v463_v20 }
 0x15c   :  { %v1643_v36 = vpop.eup %1642  ;;  %v407_v50 = vadd.f32 1e-05, %v375_v13  ;;  %v502_v51 = vmul.f32 %v2161_v60, %v464_v2  ;;  %1492 = vmatprep.mubr.msk.f32.mxu0 %vm60_vm0, %v538_v15 }
 0x15d   :  { %v408_v0 = vadd.f32 1e-05, %v376_v46  ;;  %v1645_v10 = vpop.eup %1644  ;;  %v337_v29 = vpop.xlane.xlu1 %336  ;;  %v539_v8 = vadd.f32 %v2167_v34, %v501_v1  ;;  %v465_v31 = vmul.f32 %v1643_v36, %v2042_v33 }
 0x15e   :  { %v340_v52 = vpop.xlane.xlu0 %339  ;;  %1654 = vrsqrt.f32 %v407_v50  ;;  %v377_v58 = vmul.f32 0.25, %v337_v29  ;;  %v540_v24 = vadd.f32 %v2167_v34, %v502_v51  ;;  %v466_v62 = vmul.f32 %v1645_v10, %v2051_v47 }
 0x15f   :  { %v378_v5 = vmul.f32 0.25, %v340_v52  ;;  %1656 = vrsqrt.f32 %v408_v0  ;;  %1493 = vmatmul.mubr.msk.f32.gmra.mrb[16].mxu0 %vm60_vm0, %v539_v8  ;;  %v503_v17 = vmul.f32 %v2161_v60, %v465_v31 }
 0x160   :  { %v1647_v55 = vpop.eup %1646  ;;  %v409_v40 = vadd.f32 1e-05, %v377_v58  ;;  %1495 = vmatprep.mubr.msk.f32.mxu0 %vm60_vm0, %v540_v24  ;;  %v504_v30 = vmul.f32 %v2161_v60, %v466_v62  ;;  %v925_v24 = vld [vmem:[%s2543_s5 + $0x30] sm:$0xff] }
 0x161   :  { %v410_v41 = vadd.f32 1e-05, %v378_v5  ;;  %v1649_v4 = vpop.eup %1648  ;;  %v343_v56 = vpop.xlane.xlu1 %342  ;;  %v541_v43 = vadd.f32 %v2167_v34, %v503_v17  ;;  %v467_v12 = vmul.f32 %v1647_v55, %v2054_v37 }
 0x162   :  { %v346_v33 = vpop.xlane.xlu0 %345  ;;  %1658 = vrsqrt.f32 %v409_v40  ;;  %v379_v14 = vmul.f32 0.25, %v343_v56  ;;  %v468_v28 = vmul.f32 %v1649_v4, %v2066_v63  ;;  %v542_v47 = vadd.f32 %v2167_v34, %v504_v30 }
 0x163   :  { %v380_v26 = vmul.f32 0.25, %v346_v33  ;;  %1660 = vrsqrt.f32 %v410_v41  ;;  %1496 = vmatmul.mubr.msk.f32.gmra.mrb[18].mxu0 %vm60_vm0, %v541_v43  ;;  %v505_v9 = vmul.f32 %v2161_v60, %v467_v12 }
 0x164   :  { %v1651_v21 = vpop.eup %1650  ;;  %v411_v18 = vadd.f32 1e-05, %v379_v14  ;;  %v506_v59 = vmul.f32 %v2161_v60, %v468_v28  ;;  %1498 = vmatprep.mubr.msk.f32.mxu0 %vm60_vm0, %v542_v47 }
 0x165   :  { %v412_v11 = vadd.f32 1e-05, %v380_v26  ;;  %v1653_v19 = vpop.eup %1652  ;;  %v349_v37 = vpop.xlane.xlu1 %348  ;;  %v543_v61 = vadd.f32 %v2167_v34, %v505_v9  ;;  %v469_v63 = vmul.f32 %v1651_v21, %v2069_v3 }
 0x166   :  { %1662 = vrsqrt.f32 %v411_v18  ;;  %v381_v44 = vmul.f32 0.25, %v349_v37  ;;  %v544_v23 = vadd.f32 %v2167_v34, %v506_v59  ;;  %v470_v16 = vmul.f32 %v1653_v19, %v2078_v45 }
 0x167   :  { %1664 = vrsqrt.f32 %v412_v11  ;;  %1499 = vmatmul.mubr.msk.f32.gmra.mrb[20].mxu0 %vm60_vm0, %v543_v61  ;;  %v507_v7 = vmul.f32 %v2161_v60, %v469_v63 }
 0x168   :  { %v1655_v32 = vpop.eup %1654  ;;  %v413_v35 = vadd.f32 1e-05, %v381_v44  ;;  %1501 = vmatprep.mubr.msk.f32.mxu0 %vm60_vm0, %v544_v23  ;;  %v508_v27 = vmul.f32 %v2161_v60, %v470_v16 }
 0x169   :  { %v1657_v48 = vpop.eup %1656  ;;  %v545_v3 = vadd.f32 %v2167_v34, %v507_v7  ;;  %v471_v25 = vmul.f32 %v1655_v32, %v2081_v22 }
 0x16a   :  { %1666 = vrsqrt.f32 %v413_v35  ;;  %v546_v39 = vadd.f32 %v2167_v34, %v508_v27  ;;  %v472_v45 = vmul.f32 %v1657_v48, %v2090_v38 }
 0x16b   :  { %1502 = vmatmul.mubr.msk.f32.gmra.mrb[22].mxu0 %vm60_vm0, %v545_v3  ;;  %v509_v42 = vmul.f32 %v2161_v60, %v471_v25 }
 0x16c   :  { %v1659_v20 = vpop.eup %1658  ;;  %1504 = vmatprep.mubr.msk.f32.mxu0 %vm60_vm0, %v546_v39  ;;  %v510_v13 = vmul.f32 %v2161_v60, %v472_v45 }
 0x16d   :  { %v1661_v46 = vpop.eup %1660  ;;  %v547_v2 = vadd.f32 %v2167_v34, %v509_v42  ;;  %v473_v15 = vmul.f32 %v1659_v20, %v2093_v49 }
 0x16e   :  { %v548_v22 = vadd.f32 %v2167_v34, %v510_v13  ;;  %v474_v1 = vmul.f32 %v1661_v46, %v2102_v54 }
 0x16f   :  { %1505 = vmatmul.mubr.msk.f32.gmra.mrb[24].mxu0 %vm60_vm0, %v547_v2  ;;  %v511_v38 = vmul.f32 %v2161_v60, %v473_v15 }
 0x170   :  { %v1663_v36 = vpop.eup %1662  ;;  %1507 = vmatprep.mubr.msk.f32.mxu0 %vm60_vm0, %v548_v22  ;;  %v512_v50 = vmul.f32 %v2161_v60, %v474_v1 }
 0x171   :  { %v1665_v0 = vpop.eup %1664  ;;  %v549_v51 = vadd.f32 %v2167_v34, %v511_v38  ;;  %v475_v10 = vmul.f32 %v1663_v36, %v2105_v53 }
 0x172   :  { %v550_v49 = vadd.f32 %v2167_v34, %v512_v50  ;;  %v476_v29 = vmul.f32 %v1665_v0, %v2114_v6 }
 0x173   :  { %1508 = vmatmul.mubr.msk.f32.gmra.mrb[26].mxu0 %vm60_vm0, %v549_v51  ;;  %v513_v54 = vmul.f32 %v2161_v60, %v475_v10 }
 0x174   :  { %v1667_v52 = vpop.eup %1666  ;;  %1510 = vmatprep.mubr.msk.f32.mxu0 %vm60_vm0, %v550_v49  ;;  %v514_v8 = vmul.f32 %v2161_v60, %v476_v29 }
 0x175   :  { %v551_v31 = vadd.f32 %v2167_v34, %v513_v54  ;;  %v477_v58 = vmul.f32 %v1667_v52, %v2117_v57  ;;  %v926_v57 = vld [vmem:[%s2543_s5 + $0x38] sm:$0xff] }
 0x176   :  { %v552_v5 = vadd.f32 %v2167_v34, %v514_v8  ;;  %v1592_v17 = vpack.c.bf16 %v926_v57, %v925_v24 }
 0x177   :  { %1511 = vmatmul.mubr.msk.f32.gmra.mrb[28].mxu0 %vm60_vm0, %v551_v31  ;;  %v515_v53 = vmul.f32 %v2161_v60, %v477_v58  ;;  %v2310_v60 = vld [vmem:[%s2546_s4] ss:$0 sm:$0xff] }
 0x178   :  { %1513 = vmatprep.mubr.msk.f32.mxu0 %vm60_vm0, %v552_v5  ;;  %1593 = vmatprep.subr.bf16.mxu0 %v1592_v17 }
 0x179   :  { %v553_v6 = vadd.f32 %v2167_v34, %v515_v53  ;;  %1599 = vmatprep.subr.bf16.mxu1 %v1592_v17  ;;  %1595 = vmatpush3.bf16.msra.mxu0 %v1592_v17 }
 0x17a   :  { %1603 = vmatpush3.bf16.msra.mxu1 %v1592_v17 }
 0x17b   :  { %1514 = vmatmul.mubr.msk.f32.gmra.mrb[30].mxu0 %vm60_vm0, %v553_v6 }
 0x212   :  { %v1470_v34 = vpop.f32.mrb[0].mxu0 }
 0x213   :  { %v734_v62 = vadd.f32 %v1470_v34, %v2310_v60  ;;  %v728_v55 = vpop.f32.mrb[1].mxu0 }
 0x214   :  { %v729_v40 = vadd.f32 %v2310_v60, %v728_v55 }
 0x215   :  { %v888_v56 = vmax.f32 %v734_v62, 0.0 }
 0x216   :  { %v887_v41 = vmax.f32 %v729_v40, 0.0  ;;  %v1473_v4 = vpop.f32.mrb[2].mxu0 }
 0x217   :  { %v744_v33 = vadd.f32 %v1473_v4, %v2310_v60  ;;  %v738_v43 = vpop.f32.mrb[3].mxu0 }
 0x218   :  { %v739_v30 = vadd.f32 %v2310_v60, %v738_v43  ;;  %1532 = vmatprep.mubr.msk.f32.mxu0 %vm934_vm2, %v887_v41 }
 0x219   :  { %1533 = vmatmul.mubr.msk.f32.vlgmr.msra.gmra.mrb[32].mxu0 %vm934_vm2, %v888_v56  ;;  %v890_v26 = vmax.f32 %v744_v33, 0.0 }
 0x21a   :  { %v889_v12 = vmax.f32 %v739_v30, 0.0  ;;  %v1476_v14 = vpop.f32.mrb[4].mxu0 }
 0x21b   :  { %v754_v28 = vadd.f32 %v1476_v14, %v2310_v60  ;;  %v748_v47 = vpop.f32.mrb[5].mxu0 }
 0x21c   :  { %v749_v9 = vadd.f32 %v2310_v60, %v748_v47  ;;  %1535 = vmatprep.mubr.msk.f32.mxu1 %vm934_vm2, %v889_v12 }
 0x21d   :  { %1536 = vmatmul.mubr.msk.f32.vlgmr.msra.gmra.mrb[0].mxu1 %vm934_vm2, %v890_v26  ;;  %v892_v11 = vmax.f32 %v754_v28, 0.0 }
 0x21e   :  { %v891_v21 = vmax.f32 %v749_v9, 0.0  ;;  %v1479_v18 = vpop.f32.mrb[6].mxu0 }
 0x21f   :  { %v764_v59 = vadd.f32 %v1479_v18, %v2310_v60  ;;  %v758_v19 = vpop.f32.mrb[7].mxu0 }
 0x220   :  { %v759_v37 = vadd.f32 %v2310_v60, %v758_v19  ;;  %1538 = vmatprep.mubr.msk.f32.mxu1 %vm934_vm2, %v891_v21 }
 0x221   :  { %1539 = vmatmul.mubr.msk.f32.gmra.mrb[2].mxu1 %vm934_vm2, %v892_v11  ;;  %v894_v44 = vmax.f32 %v764_v59, 0.0 }
 0x222   :  { %v893_v61 = vmax.f32 %v759_v37, 0.0  ;;  %v1482_v63 = vpop.f32.mrb[8].mxu0 }
 0x223   :  { %v774_v23 = vadd.f32 %v1482_v63, %v2310_v60  ;;  %v768_v16 = vpop.f32.mrb[9].mxu0 }
 0x224   :  { %v769_v7 = vadd.f32 %v2310_v60, %v768_v16  ;;  %1541 = vmatprep.mubr.msk.f32.mxu1 %vm934_vm2, %v893_v61 }
 0x225   :  { %1542 = vmatmul.mubr.msk.f32.gmra.mrb[4].mxu1 %vm934_vm2, %v894_v44  ;;  %v896_v27 = vmax.f32 %v774_v23, 0.0 }
 0x226   :  { %v895_v32 = vmax.f32 %v769_v7, 0.0  ;;  %v1485_v35 = vpop.f32.mrb[10].mxu0 }
 0x227   :  { %v784_v48 = vadd.f32 %v1485_v35, %v2310_v60  ;;  %v778_v3 = vpop.f32.mrb[11].mxu0 }
 0x228   :  { %v779_v25 = vadd.f32 %v2310_v60, %v778_v3  ;;  %1544 = vmatprep.mubr.msk.f32.mxu1 %vm934_vm2, %v895_v32 }
 0x229   :  { %1545 = vmatmul.mubr.msk.f32.gmra.mrb[6].mxu1 %vm934_vm2, %v896_v27  ;;  %v898_v42 = vmax.f32 %v784_v48, 0.0 }
 0x22a   :  { %v897_v39 = vmax.f32 %v779_v25, 0.0  ;;  %v1488_v45 = vpop.f32.mrb[12].mxu0  ;;  %v2379_v25 = vld [vmem:[%s2547_s6] ss:$0 sm:$0xff] }
 0x22b   :  { %v794_v20 = vadd.f32 %v1488_v45, %v2310_v60  ;;  %v788_v13 = vpop.f32.mrb[13].mxu0 }
 0x22c   :  { %v789_v46 = vadd.f32 %v2310_v60, %v788_v13  ;;  %1547 = vmatprep.mubr.msk.f32.mxu1 %vm934_vm2, %v897_v39 }
 0x22d   :  { %1548 = vmatmul.mubr.msk.f32.gmra.mrb[8].mxu1 %vm934_vm2, %v898_v42  ;;  %v900_v22 = vmax.f32 %v794_v20, 0.0 }
 0x22e   :  { %v899_v2 = vmax.f32 %v789_v46, 0.0  ;;  %v1491_v15 = vpop.f32.mrb[14].mxu0 }
 0x22f   :  { %v804_v1 = vadd.f32 %v1491_v15, %v2310_v60  ;;  %v798_v38 = vpop.f32.mrb[15].mxu0 }
 0x230   :  { %v799_v36 = vadd.f32 %v2310_v60, %v798_v38  ;;  %1550 = vmatprep.mubr.msk.f32.mxu1 %vm934_vm2, %v899_v2 }
 0x231   :  { %1551 = vmatmul.mubr.msk.f32.gmra.mrb[10].mxu1 %vm934_vm2, %v900_v22  ;;  %v902_v51 = vmax.f32 %v804_v1, 0.0 }
 0x232   :  { %v901_v50 = vmax.f32 %v799_v36, 0.0  ;;  %v1494_v0 = vpop.f32.mrb[16].mxu0 }
 0x233   :  { %v814_v10 = vadd.f32 %v1494_v0, %v2310_v60  ;;  %v808_v49 = vpop.f32.mrb[17].mxu0 }
 0x234   :  { %v809_v29 = vadd.f32 %v2310_v60, %v808_v49  ;;  %1553 = vmatprep.mubr.msk.f32.mxu1 %vm934_vm2, %v901_v50 }
 0x235   :  { %1554 = vmatmul.mubr.msk.f32.gmra.mrb[12].mxu1 %vm934_vm2, %v902_v51  ;;  %v904_v8 = vmax.f32 %v814_v10, 0.0 }
 0x236   :  { %v903_v54 = vmax.f32 %v809_v29, 0.0  ;;  %v1497_v52 = vpop.f32.mrb[18].mxu0 }
 0x237   :  { %v824_v31 = vadd.f32 %v1497_v52, %v2310_v60  ;;  %v818_v58 = vpop.f32.mrb[19].mxu0 }
 0x238   :  { %v819_v5 = vadd.f32 %v2310_v60, %v818_v58  ;;  %1556 = vmatprep.mubr.msk.f32.mxu1 %vm934_vm2, %v903_v54 }
 0x239   :  { %1557 = vmatmul.mubr.msk.f32.gmra.mrb[14].mxu1 %vm934_vm2, %v904_v8  ;;  %v906_v24 = vmax.f32 %v824_v31, 0.0 }
 0x23a   :  { %v905_v53 = vmax.f32 %v819_v5, 0.0  ;;  %v1500_v6 = vpop.f32.mrb[20].mxu0 }
 0x23b   :  { %v834_v57 = vadd.f32 %v1500_v6, %v2310_v60  ;;  %v828_v17 = vpop.f32.mrb[21].mxu0 }
 0x23c   :  { %v829_v34 = vadd.f32 %v2310_v60, %v828_v17  ;;  %1559 = vmatprep.mubr.msk.f32.mxu1 %vm934_vm2, %v905_v53 }
 0x23d   :  { %1560 = vmatmul.mubr.msk.f32.gmra.mrb[16].mxu1 %vm934_vm2, %v906_v24  ;;  %v908_v40 = vmax.f32 %v834_v57, 0.0 }
 0x23e   :  { %v907_v62 = vmax.f32 %v829_v34, 0.0  ;;  %v1503_v55 = vpop.f32.mrb[22].mxu0 }
 0x23f   :  { %v844_v41 = vadd.f32 %v1503_v55, %v2310_v60  ;;  %v838_v4 = vpop.f32.mrb[23].mxu0 }
 0x240   :  { %v839_v56 = vadd.f32 %v2310_v60, %v838_v4  ;;  %1562 = vmatprep.mubr.msk.f32.mxu1 %vm934_vm2, %v907_v62 }
 0x241   :  { %1563 = vmatmul.mubr.msk.f32.gmra.mrb[18].mxu1 %vm934_vm2, %v908_v40  ;;  %v910_v30 = vmax.f32 %v844_v41, 0.0 }
 0x242   :  { %v909_v33 = vmax.f32 %v839_v56, 0.0  ;;  %v1506_v43 = vpop.f32.mrb[24].mxu0 }
 0x243   :  { %v854_v12 = vadd.f32 %v1506_v43, %v2310_v60  ;;  %v848_v14 = vpop.f32.mrb[25].mxu0 }
 0x244   :  { %v849_v26 = vadd.f32 %v2310_v60, %v848_v14  ;;  %1565 = vmatprep.mubr.msk.f32.mxu1 %vm934_vm2, %v909_v33 }
 0x245   :  { %1566 = vmatmul.mubr.msk.f32.gmra.mrb[20].mxu1 %vm934_vm2, %v910_v30  ;;  %v912_v9 = vmax.f32 %v854_v12, 0.0 }
 0x246   :  { %v911_v28 = vmax.f32 %v849_v26, 0.0  ;;  %v1509_v47 = vpop.f32.mrb[26].mxu0 }
 0x247   :  { %v864_v21 = vadd.f32 %v1509_v47, %v2310_v60  ;;  %v858_v18 = vpop.f32.mrb[27].mxu0 }
 0x248   :  { %v859_v11 = vadd.f32 %v2310_v60, %v858_v18  ;;  %1568 = vmatprep.mubr.msk.f32.mxu1 %vm934_vm2, %v911_v28 }
 0x249   :  { %1569 = vmatmul.mubr.msk.f32.gmra.mrb[22].mxu1 %vm934_vm2, %v912_v9  ;;  %v914_v37 = vmax.f32 %v864_v21, 0.0 }
 0x24a   :  { %v913_v59 = vmax.f32 %v859_v11, 0.0  ;;  %v1512_v19 = vpop.f32.mrb[28].mxu0 }
 0x24b   :  { %v874_v61 = vadd.f32 %v1512_v19, %v2310_v60  ;;  %v868_v63 = vpop.f32.mrb[29].mxu0 }
 0x24c   :  { %v869_v44 = vadd.f32 %v2310_v60, %v868_v63  ;;  %1571 = vmatprep.mubr.msk.f32.mxu1 %vm934_vm2, %v913_v59 }
 0x24d   :  { %1572 = vmatmul.mubr.msk.f32.gmra.mrb[24].mxu1 %vm934_vm2, %v914_v37  ;;  %v916_v7 = vmax.f32 %v874_v61, 0.0 }
 0x24e   :  { %v915_v23 = vmax.f32 %v869_v44, 0.0  ;;  %v1515_v16 = vpop.f32.mrb[30].mxu0 }
 0x24f   :  { %v884_v32 = vadd.f32 %v1515_v16, %v2310_v60  ;;  %v878_v35 = vpop.f32.mrb[31].mxu0 }
 0x250   :  { %v879_v27 = vadd.f32 %v2310_v60, %v878_v35  ;;  %1574 = vmatprep.mubr.msk.f32.mxu1 %vm934_vm2, %v915_v23 }
 0x251   :  { %1575 = vmatmul.mubr.msk.f32.gmra.mrb[26].mxu1 %vm934_vm2, %v916_v7  ;;  %v918_v3 = vmax.f32 %v884_v32, 0.0 }
 0x252   :  { %v917_v48 = vmax.f32 %v879_v27, 0.0 }
 0x254   :  { %1577 = vmatprep.mubr.msk.f32.mxu1 %vm934_vm2, %v917_v48 }
 0x255   :  { %1578 = vmatmul.mubr.msk.f32.gmra.mrb[28].mxu1 %vm934_vm2, %v918_v3 }
 0x2ec   :  { %v1534_v39 = vpop.f32.mrb[32].mxu0 }
 0x2ed   :  { %v1103_v45 = vadd.f32 %v1534_v39, %v2379_v25  ;;  %v1097_v42 = vpop.f32.mrb[33].mxu0 }
 0x2ee   :  { %v1098_v60 = vadd.f32 %v2379_v25, %v1097_v42 }
 0x2ef   :  { %v1257_v20 = vmax.f32 %v1103_v45, 0.0 }
 0x2f0   :  { %v1256_v13 = vmax.f32 %v1098_v60, 0.0  ;;  %v1537_v46 = vpop.f32.mrb[0].mxu1 }
 0x2f1   :  { %1289 = vst.msk [vmem:[%s2548_s7 + $0x8] sm:$0xff] %vm934_vm2, %v1257_v20  ;;  %v1113_v2 = vadd.f32 %v1537_v46, %v2379_v25  ;;  %v1107_v15 = vpop.f32.mrb[1].mxu1 }
 0x2f2   :  { %1288 = vst.msk [vmem:[%s2548_s7] sm:$0xff] %vm934_vm2, %v1256_v13  ;;  %v1108_v22 = vadd.f32 %v2379_v25, %v1107_v15 }
 0x2f3   :  { %v1259_v1 = vmax.f32 %v1113_v2, 0.0 }
 0x2f4   :  { %v1258_v38 = vmax.f32 %v1108_v22, 0.0  ;;  %v1540_v36 = vpop.f32.mrb[2].mxu1 }
 0x2f5   :  { %1291 = vst.msk [vmem:[%s2548_s7 + $0x18] sm:$0xff] %vm934_vm2, %v1259_v1  ;;  %v1123_v50 = vadd.f32 %v1540_v36, %v2379_v25  ;;  %v1117_v0 = vpop.f32.mrb[3].mxu1 }
 0x2f6   :  { %1290 = vst.msk [vmem:[%s2548_s7 + $0x10] sm:$0xff] %vm934_vm2, %v1258_v38  ;;  %v1118_v51 = vadd.f32 %v2379_v25, %v1117_v0 }
 0x2f7   :  { %v1261_v10 = vmax.f32 %v1123_v50, 0.0 }
 0x2f8   :  { %v1260_v49 = vmax.f32 %v1118_v51, 0.0  ;;  %v1543_v29 = vpop.f32.mrb[4].mxu1 }
 0x2f9   :  { %1293 = vst.msk [vmem:[%s2548_s7 + $0x28] sm:$0xff] %vm934_vm2, %v1261_v10  ;;  %v1133_v54 = vadd.f32 %v1543_v29, %v2379_v25  ;;  %v1127_v52 = vpop.f32.mrb[5].mxu1 }
 0x2fa   :  { %1292 = vst.msk [vmem:[%s2548_s7 + $0x20] sm:$0xff] %vm934_vm2, %v1260_v49  ;;  %v1128_v8 = vadd.f32 %v2379_v25, %v1127_v52 }
 0x2fb   :  { %v1263_v31 = vmax.f32 %v1133_v54, 0.0 }
 0x2fc   :  { %v1262_v58 = vmax.f32 %v1128_v8, 0.0  ;;  %v1546_v5 = vpop.f32.mrb[6].mxu1 }
 0x2fd   :  { %1295 = vst.msk [vmem:[%s2548_s7 + $0x38] sm:$0xff] %vm934_vm2, %v1263_v31  ;;  %v1143_v53 = vadd.f32 %v1546_v5, %v2379_v25  ;;  %v1137_v6 = vpop.f32.mrb[7].mxu1 }
 0x2fe   :  { %1294 = vst.msk [vmem:[%s2548_s7 + $0x30] sm:$0xff] %vm934_vm2, %v1262_v58  ;;  %v1138_v24 = vadd.f32 %v2379_v25, %v1137_v6 }
 0x2ff   :  { %v1265_v57 = vmax.f32 %v1143_v53, 0.0 }
 0x300   :  { %v1264_v17 = vmax.f32 %v1138_v24, 0.0  ;;  %v1549_v34 = vpop.f32.mrb[8].mxu1 }
 0x301   :  { %1297 = vst.msk [vmem:[%s2548_s7 + $0x48] sm:$0xff] %vm934_vm2, %v1265_v57  ;;  %v1153_v62 = vadd.f32 %v1549_v34, %v2379_v25  ;;  %v1147_v55 = vpop.f32.mrb[9].mxu1 }
 0x302   :  { %1296 = vst.msk [vmem:[%s2548_s7 + $0x40] sm:$0xff] %vm934_vm2, %v1264_v17  ;;  %v1148_v40 = vadd.f32 %v2379_v25, %v1147_v55 }
 0x303   :  { %v1267_v41 = vmax.f32 %v1153_v62, 0.0 }
 0x304   :  { %v1266_v4 = vmax.f32 %v1148_v40, 0.0  ;;  %v1552_v56 = vpop.f32.mrb[10].mxu1 }
 0x305   :  { %1299 = vst.msk [vmem:[%s2548_s7 + $0x58] sm:$0xff] %vm934_vm2, %v1267_v41  ;;  %v1163_v33 = vadd.f32 %v1552_v56, %v2379_v25  ;;  %v1157_v43 = vpop.f32.mrb[11].mxu1 }
 0x306   :  { %1298 = vst.msk [vmem:[%s2548_s7 + $0x50] sm:$0xff] %vm934_vm2, %v1266_v4  ;;  %v1158_v30 = vadd.f32 %v2379_v25, %v1157_v43 }
 0x307   :  { %v1269_v12 = vmax.f32 %v1163_v33, 0.0 }
 0x308   :  { %v1268_v14 = vmax.f32 %v1158_v30, 0.0  ;;  %v1555_v26 = vpop.f32.mrb[12].mxu1 }
 0x309   :  { %1301 = vst.msk [vmem:[%s2548_s7 + $0x68] sm:$0xff] %vm934_vm2, %v1269_v12  ;;  %v1173_v28 = vadd.f32 %v1555_v26, %v2379_v25  ;;  %v1167_v47 = vpop.f32.mrb[13].mxu1 }
 0x30a   :  { %1300 = vst.msk [vmem:[%s2548_s7 + $0x60] sm:$0xff] %vm934_vm2, %v1268_v14  ;;  %v1168_v9 = vadd.f32 %v2379_v25, %v1167_v47 }
 0x30b   :  { %v1271_v21 = vmax.f32 %v1173_v28, 0.0 }
 0x30c   :  { %v1270_v18 = vmax.f32 %v1168_v9, 0.0  ;;  %v1558_v11 = vpop.f32.mrb[14].mxu1 }
 0x30d   :  { %1303 = vst.msk [vmem:[%s2548_s7 + $0x78] sm:$0xff] %vm934_vm2, %v1271_v21  ;;  %v1183_v59 = vadd.f32 %v1558_v11, %v2379_v25  ;;  %v1177_v19 = vpop.f32.mrb[15].mxu1 }
 0x30e   :  { %1302 = vst.msk [vmem:[%s2548_s7 + $0x70] sm:$0xff] %vm934_vm2, %v1270_v18  ;;  %v1178_v37 = vadd.f32 %v2379_v25, %v1177_v19 }
 0x30f   :  { %v1273_v61 = vmax.f32 %v1183_v59, 0.0 }
 0x310   :  { %v1272_v63 = vmax.f32 %v1178_v37, 0.0  ;;  %v1561_v44 = vpop.f32.mrb[16].mxu1 }
 0x311   :  { %1305 = vst.msk [vmem:[%s2548_s7 + $0x88] sm:$0xff] %vm934_vm2, %v1273_v61  ;;  %v1193_v23 = vadd.f32 %v1561_v44, %v2379_v25  ;;  %v1187_v16 = vpop.f32.mrb[17].mxu1 }
 0x312   :  { %1304 = vst.msk [vmem:[%s2548_s7 + $0x80] sm:$0xff] %vm934_vm2, %v1272_v63  ;;  %v1188_v7 = vadd.f32 %v2379_v25, %v1187_v16 }
 0x313   :  { %v1275_v32 = vmax.f32 %v1193_v23, 0.0 }
 0x314   :  { %v1274_v35 = vmax.f32 %v1188_v7, 0.0  ;;  %v1564_v27 = vpop.f32.mrb[18].mxu1 }
 0x315   :  { %1307 = vst.msk [vmem:[%s2548_s7 + $0x98] sm:$0xff] %vm934_vm2, %v1275_v32  ;;  %v1203_v48 = vadd.f32 %v1564_v27, %v2379_v25  ;;  %v1197_v3 = vpop.f32.mrb[19].mxu1 }
 0x316   :  { %1306 = vst.msk [vmem:[%s2548_s7 + $0x90] sm:$0xff] %vm934_vm2, %v1274_v35  ;;  %v1198_v39 = vadd.f32 %v2379_v25, %v1197_v3 }
 0x317   :  { %v1277_v45 = vmax.f32 %v1203_v48, 0.0 }
 0x318   :  { %v1276_v42 = vmax.f32 %v1198_v39, 0.0  ;;  %v1567_v60 = vpop.f32.mrb[20].mxu1 }
 0x319   :  { %1309 = vst.msk [vmem:[%s2548_s7 + $0xa8] sm:$0xff] %vm934_vm2, %v1277_v45  ;;  %v1213_v20 = vadd.f32 %v1567_v60, %v2379_v25  ;;  %v1207_v13 = vpop.f32.mrb[21].mxu1 }
 0x31a   :  { %1308 = vst.msk [vmem:[%s2548_s7 + $0xa0] sm:$0xff] %vm934_vm2, %v1276_v42  ;;  %v1208_v46 = vadd.f32 %v2379_v25, %v1207_v13 }
 0x31b   :  { %v1279_v2 = vmax.f32 %v1213_v20, 0.0 }
 0x31c   :  { %v1278_v15 = vmax.f32 %v1208_v46, 0.0  ;;  %v1570_v22 = vpop.f32.mrb[22].mxu1 }
 0x31d   :  { %1311 = vst.msk [vmem:[%s2548_s7 + $0xb8] sm:$0xff] %vm934_vm2, %v1279_v2  ;;  %v1223_v1 = vadd.f32 %v1570_v22, %v2379_v25  ;;  %v1217_v38 = vpop.f32.mrb[23].mxu1 }
 0x31e   :  { %1310 = vst.msk [vmem:[%s2548_s7 + $0xb0] sm:$0xff] %vm934_vm2, %v1278_v15  ;;  %v1218_v36 = vadd.f32 %v2379_v25, %v1217_v38 }
 0x31f   :  { %v1281_v50 = vmax.f32 %v1223_v1, 0.0 }
 0x320   :  { %v1280_v0 = vmax.f32 %v1218_v36, 0.0  ;;  %v1573_v51 = vpop.f32.mrb[24].mxu1 }
 0x321   :  { %1313 = vst.msk [vmem:[%s2548_s7 + $0xc8] sm:$0xff] %vm934_vm2, %v1281_v50  ;;  %v1233_v10 = vadd.f32 %v1573_v51, %v2379_v25  ;;  %v1227_v49 = vpop.f32.mrb[25].mxu1 }
 0x322   :  { %1312 = vst.msk [vmem:[%s2548_s7 + $0xc0] sm:$0xff] %vm934_vm2, %v1280_v0  ;;  %v1228_v29 = vadd.f32 %v2379_v25, %v1227_v49 }
 0x323   :  { %v1283_v54 = vmax.f32 %v1233_v10, 0.0 }
 0x324   :  { %v1282_v52 = vmax.f32 %v1228_v29, 0.0  ;;  %v1576_v8 = vpop.f32.mrb[26].mxu1 }
 0x325   :  { %1315 = vst.msk [vmem:[%s2548_s7 + $0xd8] sm:$0xff] %vm934_vm2, %v1283_v54  ;;  %v1243_v31 = vadd.f32 %v1576_v8, %v2379_v25  ;;  %v1237_v58 = vpop.f32.mrb[27].mxu1 }
 0x326   :  { %1314 = vst.msk [vmem:[%s2548_s7 + $0xd0] sm:$0xff] %vm934_vm2, %v1282_v52  ;;  %v1238_v5 = vadd.f32 %v2379_v25, %v1237_v58 }
 0x327   :  { %v1285_v53 = vmax.f32 %v1243_v31, 0.0 }
 0x328   :  { %v1284_v6 = vmax.f32 %v1238_v5, 0.0  ;;  %v1579_v24 = vpop.f32.mrb[28].mxu1 }
 0x329   :  { %1317 = vst.msk [vmem:[%s2548_s7 + $0xe8] sm:$0xff] %vm934_vm2, %v1285_v53  ;;  %v1253_v57 = vadd.f32 %v1579_v24, %v2379_v25  ;;  %v1247_v17 = vpop.f32.mrb[29].mxu1 }
 0x32a   :  { %1316 = vst.msk [vmem:[%s2548_s7 + $0xe0] sm:$0xff] %vm934_vm2, %v1284_v6  ;;  %v1248_v34 = vadd.f32 %v2379_v25, %v1247_v17 }
 0x32b   :  { %v1287_v62 = vmax.f32 %v1253_v57, 0.0 }
 0x32c   :  { %v1286_v55 = vmax.f32 %v1248_v34, 0.0 }
 0x32d   :  { %1319 = vst.msk [vmem:[%s2548_s7 + $0xf8] sm:$0xff] %vm934_vm2, %v1287_v62 }
 0x32e   :  { %1318 = vst.msk [vmem:[%s2548_s7 + $0xf0] sm:$0xff] %vm934_vm2, %v1286_v55 }

</bundles_post_ra>
